<compile_context>
chip_gen: v7x
topology: tpu7x:2x2x1
jax: 0.10.0
libtpu: 0.0.40
codegen_flags: <defaults>
</compile_context>

<pallas_src>
import functools

import jax
import jax.numpy as jnp
import numpy as np
from jax.experimental import pallas as pl
from jax.experimental.pallas import tpu as pltpu

INPUT_DIM = 1
HIDDEN_DIM = 32
NUM_LAYERS = 2
OUTPUT_DIM = 1


def _lstm_kernel(x_ref,            # (T, B, Din)   VMEM
                 wih0_ref,         # (Din, 4H)
                 b0_ref,           # (1,   4H)   (b_ih + b_hh for layer 0)
                 whh0_ref,         # (H,   4H)
                 wih1_ref,         # (H,   4H)
                 whh1_ref,         # (H,   4H)
                 b1_ref,           # (1,   4H)   (b_ih + b_hh for layer 1)
                 fcw_ref,          # (H,   O)
                 fcb_ref,          # (1,   O)
                 out_ref,          # (B,   O)
                 *, hidden_dim, seq_len, batch, input_dim):
    H = hidden_dim
    T = seq_len
    B = batch

    # ---- Hoisted layer-0 input projection over all timesteps (bias folded in). ----
    x_all = x_ref[...]                                         # (T, B, Din)
    if input_dim == 1:
        # (T, B, 1) * (1, 4H) broadcast -> (T, B, 4H): pure VPU, no MXU.
        proj0 = x_all * wih0_ref[...] + b0_ref[...]
    else:
        # General fallback: one batched matmul over all timesteps.
        x2 = x_all.reshape(T * B, input_dim)
        proj0 = (jnp.dot(x2, wih0_ref[...],
                         preferred_element_type=jnp.float32).reshape(T, B, 4 * H)
                 + b0_ref[...])

    # ---- Hoisted constants (loaded / broadcast once, vreg-resident for the loop). ----
    whh0 = whh0_ref[...]                                       # (H, 4H)
    wih1 = wih1_ref[...]                                       # (H, 4H)
    whh1 = whh1_ref[...]                                       # (H, 4H)
    b1_b = jnp.broadcast_to(b1_ref[...], (B, 4 * H))           # (B, 4H)

    def gates_to_hc(gates, c_prev):
        # One sigmoid + one tanh over the full (B, 4H) vector, then static lane slices.
        sg = jax.nn.sigmoid(gates)
        th = jnp.tanh(gates)
        i_g = sg[:, 0 * H:1 * H]
        f_g = sg[:, 1 * H:2 * H]
        g_g = th[:, 2 * H:3 * H]
        o_g = sg[:, 3 * H:4 * H]
        c_new = f_g * c_prev + i_g * g_g
        h_new = o_g * jnp.tanh(c_new)
        return h_new, c_new

    # Initial hidden / cell states are zeros (matches h0/c0 in the torch module);
    # carried as values (vregs), no VMEM scratch.
    z = jnp.zeros((B, H), jnp.float32)
    h0, c0, h1, c1 = z, z, z, z
    # Layer-1 gate pre-activation part that only depends on h1_{t-1}.
    # h1 starts at zero -> h1 @ W_hh1 == 0, so rec1 starts as just the bias.
    rec1 = b1_b

    # Fully unrolled time loop (T is small and static) -> static indexing, max LLO visibility.
    for t in range(T):
        # Layer 0: only the recurrent matmul remains in-loop (skipped at t=0, h0==0).
        if t == 0:
            g0 = proj0[0]
        else:
            g0 = proj0[t] + jnp.dot(h0, whh0, preferred_element_type=jnp.float32)
        h0, c0 = gates_to_hc(g0, c0)

        # Layer 1: rec1 was produced from h1_{t-1} (previous iteration), off the
        # h0_t critical chain; only the h0_t-dependent matmul remains here.
        # (inference: no dropout applied to h0 between layers)
        g1 = jnp.dot(h0, wih1, preferred_element_type=jnp.float32) + rec1
        h1, c1 = gates_to_hc(g1, c1)

        # Issue next step's h1-recurrent partial as soon as h1 is available so the
        # scheduler can overlap it with layer-0's work for step t+1.
        if t + 1 < T:
            rec1 = jnp.dot(h1, whh1, preferred_element_type=jnp.float32) + b1_b

    # fc(out[:, -1, :])  ==  fc(h of top layer at last time step)
    out_ref[...] = (jnp.dot(h1, fcw_ref[...], preferred_element_type=jnp.float32)
                    + fcb_ref[...]).astype(out_ref.dtype)


def lstm_forward(x, params):
    """x: (B, T, input_dim) float32  ->  (B, output_dim) float32."""
    B, T, Din = x.shape
    H = HIDDEN_DIM
    O = OUTPUT_DIM

    x_tbd = jnp.transpose(x, (1, 0, 2)).astype(jnp.float32)     # (T, B, Din)

    (wih0, whh0, b0, wih1, whh1, b1, fcw, fcb) = params

    kernel = functools.partial(_lstm_kernel, hidden_dim=H, seq_len=T,
                               batch=B, input_dim=Din)

    vmem = pl.BlockSpec(memory_space=pltpu.MemorySpace.VMEM)
    out = pl.pallas_call(
        kernel,
        out_shape=jax.ShapeDtypeStruct((B, O), jnp.float32),
        in_specs=[vmem] * 9,
        out_specs=vmem,
    )(x_tbd, wih0, b0, whh0, wih1, whh1, b1, fcw, fcb)
    return out


def init_params(key):
    """Deterministic parameter init, PyTorch-style uniform(-1/sqrt(H), 1/sqrt(H))."""
    H, Din, O = HIDDEN_DIM, INPUT_DIM, OUTPUT_DIM
    bound = 1.0 / np.sqrt(H)
    ks = jax.random.split(key, 12)

    def u(k, shape):
        return jax.random.uniform(k, shape, jnp.float32, -bound, bound)

    # Layer 0 (input_dim -> H); weights stored transposed: (in, 4H)
    wih0 = u(ks[0], (Din, 4 * H))
    whh0 = u(ks[1], (H, 4 * H))
    b0 = (u(ks[2], (1, 4 * H)) + u(ks[3], (1, 4 * H)))   # b_ih + b_hh
    # Layer 1 (H -> H)
    wih1 = u(ks[4], (H, 4 * H))
    whh1 = u(ks[5], (H, 4 * H))
    b1 = (u(ks[6], (1, 4 * H)) + u(ks[7], (1, 4 * H)))
    # Final linear: (H, O), bias (1, O)
    fcw = u(ks[8], (H, O))
    fcb = u(ks[9], (1, O))
    return (wih0, whh0, b0, wih1, whh1, b1, fcw, fcb)


def lstm_reference(x, params):
    """Pure-JAX reference for correctness check (same math as the kernel)."""
    (wih0, whh0, b0, wih1, whh1, b1, fcw, fcb) = params
    B, T, _ = x.shape
    H = HIDDEN_DIM

    def cell(x_t, h, c, wih, whh, b):
        g = x_t @ wih + h @ whh + b
        i = jax.nn.sigmoid(g[:, 0 * H:1 * H])
        f = jax.nn.sigmoid(g[:, 1 * H:2 * H])
        gg = jnp.tanh(g[:, 2 * H:3 * H])
        o = jax.nn.sigmoid(g[:, 3 * H:4 * H])
        c = f * c + i * gg
        h = o * jnp.tanh(c)
        return h, c

    h0 = c0 = h1 = c1 = jnp.zeros((B, H), jnp.float32)
    for t in range(T):
        x_t = x[:, t, :]
        h0, c0 = cell(x_t, h0, c0, wih0, whh0, b0)
        h1, c1 = cell(h0, h1, c1, wih1, whh1, b1)
    return h1 @ fcw + fcb


if __name__ == "__main__":
    key = jax.random.PRNGKey(0)
    k_param, k_x = jax.random.split(key)

    B, T = 2, 8
    x = jax.random.normal(k_x, (B, T, INPUT_DIM), jnp.float32)
    params = init_params(k_param)

    out = lstm_forward(x, params)
    out = jax.block_until_ready(out)

    ref = lstm_reference(x, params)
    np.testing.assert_allclose(np.asarray(out), np.asarray(ref), rtol=1e-5, atol=1e-5)

    print("KERNEL_OK")
</pallas_src>

<mosaic_0001>
module attributes {stable_mosaic.version = 11 : i64} {
  func.func @_lstm_kernel(%arg0: memref<8x2x1xf32, #tpu.memory_space<vmem>>, %arg1: memref<1x128xf32, #tpu.memory_space<vmem>>, %arg2: memref<1x128xf32, #tpu.memory_space<vmem>>, %arg3: memref<32x128xf32, #tpu.memory_space<vmem>>, %arg4: memref<32x128xf32, #tpu.memory_space<vmem>>, %arg5: memref<32x128xf32, #tpu.memory_space<vmem>>, %arg6: memref<1x128xf32, #tpu.memory_space<vmem>>, %arg7: memref<32x1xf32, #tpu.memory_space<vmem>>, %arg8: memref<1x1xf32, #tpu.memory_space<vmem>>, %arg9: memref<2x1xf32, #tpu.memory_space<vmem>>) attributes {dimension_semantics = [], scalar_prefetch = 0 : i64, scratch_operands = 0 : i64, tpu.core_type = #tpu.core_type<tc>} {
    %c0 = arith.constant 0 : index
    %c0_0 = arith.constant 0 : index
    %c0_1 = arith.constant 0 : index
    %0 = vector.load %arg0[%c0, %c0_0, %c0_1] : memref<8x2x1xf32, #tpu.memory_space<vmem>>, vector<8x2x1xf32>
    %c0_2 = arith.constant 0 : index
    %c0_3 = arith.constant 0 : index
    %1 = vector.load %arg1[%c0_2, %c0_3] : memref<1x128xf32, #tpu.memory_space<vmem>>, vector<1x128xf32>
    %2 = vector.shape_cast %1 : vector<1x128xf32> to vector<1x1x128xf32>
    %3 = vector.broadcast %0 : vector<8x2x1xf32> to vector<8x2x128xf32>
    %4 = vector.broadcast %2 : vector<1x1x128xf32> to vector<8x2x128xf32>
    %5 = arith.mulf %3, %4 : vector<8x2x128xf32>
    %c0_4 = arith.constant 0 : index
    %c0_5 = arith.constant 0 : index
    %6 = vector.load %arg2[%c0_4, %c0_5] : memref<1x128xf32, #tpu.memory_space<vmem>>, vector<1x128xf32>
    %7 = vector.shape_cast %6 : vector<1x128xf32> to vector<1x1x128xf32>
    %8 = vector.broadcast %7 : vector<1x1x128xf32> to vector<8x2x128xf32>
    %9 = arith.addf %5, %8 : vector<8x2x128xf32>
    %c0_6 = arith.constant 0 : index
    %c0_7 = arith.constant 0 : index
    %10 = vector.load %arg3[%c0_6, %c0_7] : memref<32x128xf32, #tpu.memory_space<vmem>>, vector<32x128xf32>
    %c0_8 = arith.constant 0 : index
    %c0_9 = arith.constant 0 : index
    %11 = vector.load %arg4[%c0_8, %c0_9] : memref<32x128xf32, #tpu.memory_space<vmem>>, vector<32x128xf32>
    %c0_10 = arith.constant 0 : index
    %c0_11 = arith.constant 0 : index
    %12 = vector.load %arg5[%c0_10, %c0_11] : memref<32x128xf32, #tpu.memory_space<vmem>>, vector<32x128xf32>
    %c0_12 = arith.constant 0 : index
    %c0_13 = arith.constant 0 : index
    %13 = vector.load %arg6[%c0_12, %c0_13] : memref<1x128xf32, #tpu.memory_space<vmem>>, vector<1x128xf32>
    %14 = vector.shape_cast %13 : vector<1x128xf32> to vector<1x128xf32>
    %15 = vector.broadcast %14 : vector<1x128xf32> to vector<2x128xf32>
    %cst = arith.constant 0.000000e+00 : f32
    %16 = vector.broadcast %cst : f32 to vector<2x32xf32>
    %17 = vector.extract_strided_slice %9 {offsets = [0, 0, 0], sizes = [1, 2, 128], strides = [1, 1, 1]} : vector<8x2x128xf32> to vector<1x2x128xf32>
    %18 = vector.shape_cast %17 : vector<1x2x128xf32> to vector<2x128xf32>
    %19 = arith.negf %18 : vector<2x128xf32>
    %20 = math.exp %19 : vector<2x128xf32>
    %cst_14 = arith.constant 1.000000e+00 : f32
    %21 = vector.broadcast %cst_14 : f32 to vector<2x128xf32>
    %22 = arith.addf %21, %20 : vector<2x128xf32>
    %23 = arith.divf %21, %22 : vector<2x128xf32>
    %24 = math.tanh %18 : vector<2x128xf32>
    %25 = vector.extract_strided_slice %23 {offsets = [0, 0], sizes = [2, 32], strides = [1, 1]} : vector<2x128xf32> to vector<2x32xf32>
    %26 = vector.extract_strided_slice %23 {offsets = [0, 32], sizes = [2, 32], strides = [1, 1]} : vector<2x128xf32> to vector<2x32xf32>
    %27 = vector.extract_strided_slice %24 {offsets = [0, 64], sizes = [2, 32], strides = [1, 1]} : vector<2x128xf32> to vector<2x32xf32>
    %28 = vector.extract_strided_slice %23 {offsets = [0, 96], sizes = [2, 32], strides = [1, 1]} : vector<2x128xf32> to vector<2x32xf32>
    %29 = arith.mulf %26, %16 : vector<2x32xf32>
    %30 = arith.mulf %25, %27 : vector<2x32xf32>
    %31 = arith.addf %29, %30 : vector<2x32xf32>
    %32 = math.tanh %31 : vector<2x32xf32>
    %33 = arith.mulf %28, %32 : vector<2x32xf32>
    %cst_15 = arith.constant dense<0.000000e+00> : vector<2x128xf32>
    %34 = tpu.matmul %33, %11, %cst_15 {dimension_numbers = #tpu.dot_dimension_numbers<[1], [0], [0], [1], [0, 0, 1, 1], [], []>} : vector<2x32xf32>, vector<32x128xf32>, vector<2x128xf32> -> vector<2x128xf32>
    %35 = arith.addf %34, %15 : vector<2x128xf32>
    %36 = arith.negf %35 : vector<2x128xf32>
    %37 = math.exp %36 : vector<2x128xf32>
    %cst_16 = arith.constant 1.000000e+00 : f32
    %38 = vector.broadcast %cst_16 : f32 to vector<2x128xf32>
    %39 = arith.addf %38, %37 : vector<2x128xf32>
    %40 = arith.divf %38, %39 : vector<2x128xf32>
    %41 = math.tanh %35 : vector<2x128xf32>
    %42 = vector.extract_strided_slice %40 {offsets = [0, 0], sizes = [2, 32], strides = [1, 1]} : vector<2x128xf32> to vector<2x32xf32>
    %43 = vector.extract_strided_slice %40 {offsets = [0, 32], sizes = [2, 32], strides = [1, 1]} : vector<2x128xf32> to vector<2x32xf32>
    %44 = vector.extract_strided_slice %41 {offsets = [0, 64], sizes = [2, 32], strides = [1, 1]} : vector<2x128xf32> to vector<2x32xf32>
    %45 = vector.extract_strided_slice %40 {offsets = [0, 96], sizes = [2, 32], strides = [1, 1]} : vector<2x128xf32> to vector<2x32xf32>
    %46 = arith.mulf %43, %16 : vector<2x32xf32>
    %47 = arith.mulf %42, %44 : vector<2x32xf32>
    %48 = arith.addf %46, %47 : vector<2x32xf32>
    %49 = math.tanh %48 : vector<2x32xf32>
    %50 = arith.mulf %45, %49 : vector<2x32xf32>
    %cst_17 = arith.constant dense<0.000000e+00> : vector<2x128xf32>
    %51 = tpu.matmul %50, %12, %cst_17 {dimension_numbers = #tpu.dot_dimension_numbers<[1], [0], [0], [1], [0, 0, 1, 1], [], []>} : vector<2x32xf32>, vector<32x128xf32>, vector<2x128xf32> -> vector<2x128xf32>
    %52 = arith.addf %51, %15 : vector<2x128xf32>
    %53 = vector.extract_strided_slice %9 {offsets = [1, 0, 0], sizes = [1, 2, 128], strides = [1, 1, 1]} : vector<8x2x128xf32> to vector<1x2x128xf32>
    %54 = vector.shape_cast %53 : vector<1x2x128xf32> to vector<2x128xf32>
    %cst_18 = arith.constant dense<0.000000e+00> : vector<2x128xf32>
    %55 = tpu.matmul %33, %10, %cst_18 {dimension_numbers = #tpu.dot_dimension_numbers<[1], [0], [0], [1], [0, 0, 1, 1], [], []>} : vector<2x32xf32>, vector<32x128xf32>, vector<2x128xf32> -> vector<2x128xf32>
    %56 = arith.addf %54, %55 : vector<2x128xf32>
    %57 = arith.negf %56 : vector<2x128xf32>
    %58 = math.exp %57 : vector<2x128xf32>
    %cst_19 = arith.constant 1.000000e+00 : f32
    %59 = vector.broadcast %cst_19 : f32 to vector<2x128xf32>
    %60 = arith.addf %59, %58 : vector<2x128xf32>
    %61 = arith.divf %59, %60 : vector<2x128xf32>
    %62 = math.tanh %56 : vector<2x128xf32>
    %63 = vector.extract_strided_slice %61 {offsets = [0, 0], sizes = [2, 32], strides = [1, 1]} : vector<2x128xf32> to vector<2x32xf32>
    %64 = vector.extract_strided_slice %61 {offsets = [0, 32], sizes = [2, 32], strides = [1, 1]} : vector<2x128xf32> to vector<2x32xf32>
    %65 = vector.extract_strided_slice %62 {offsets = [0, 64], sizes = [2, 32], strides = [1, 1]} : vector<2x128xf32> to vector<2x32xf32>
    %66 = vector.extract_strided_slice %61 {offsets = [0, 96], sizes = [2, 32], strides = [1, 1]} : vector<2x128xf32> to vector<2x32xf32>
    %67 = arith.mulf %64, %31 : vector<2x32xf32>
    %68 = arith.mulf %63, %65 : vector<2x32xf32>
    %69 = arith.addf %67, %68 : vector<2x32xf32>
    %70 = math.tanh %69 : vector<2x32xf32>
    %71 = arith.mulf %66, %70 : vector<2x32xf32>
    %cst_20 = arith.constant dense<0.000000e+00> : vector<2x128xf32>
    %72 = tpu.matmul %71, %11, %cst_20 {dimension_numbers = #tpu.dot_dimension_numbers<[1], [0], [0], [1], [0, 0, 1, 1], [], []>} : vector<2x32xf32>, vector<32x128xf32>, vector<2x128xf32> -> vector<2x128xf32>
    %73 = arith.addf %72, %52 : vector<2x128xf32>
    %74 = arith.negf %73 : vector<2x128xf32>
    %75 = math.exp %74 : vector<2x128xf32>
    %cst_21 = arith.constant 1.000000e+00 : f32
    %76 = vector.broadcast %cst_21 : f32 to vector<2x128xf32>
    %77 = arith.addf %76, %75 : vector<2x128xf32>
    %78 = arith.divf %76, %77 : vector<2x128xf32>
    %79 = math.tanh %73 : vector<2x128xf32>
    %80 = vector.extract_strided_slice %78 {offsets = [0, 0], sizes = [2, 32], strides = [1, 1]} : vector<2x128xf32> to vector<2x32xf32>
    %81 = vector.extract_strided_slice %78 {offsets = [0, 32], sizes = [2, 32], strides = [1, 1]} : vector<2x128xf32> to vector<2x32xf32>
    %82 = vector.extract_strided_slice %79 {offsets = [0, 64], sizes = [2, 32], strides = [1, 1]} : vector<2x128xf32> to vector<2x32xf32>
    %83 = vector.extract_strided_slice %78 {offsets = [0, 96], sizes = [2, 32], strides = [1, 1]} : vector<2x128xf32> to vector<2x32xf32>
    %84 = arith.mulf %81, %48 : vector<2x32xf32>
    %85 = arith.mulf %80, %82 : vector<2x32xf32>
    %86 = arith.addf %84, %85 : vector<2x32xf32>
    %87 = math.tanh %86 : vector<2x32xf32>
    %88 = arith.mulf %83, %87 : vector<2x32xf32>
    %cst_22 = arith.constant dense<0.000000e+00> : vector<2x128xf32>
    %89 = tpu.matmul %88, %12, %cst_22 {dimension_numbers = #tpu.dot_dimension_numbers<[1], [0], [0], [1], [0, 0, 1, 1], [], []>} : vector<2x32xf32>, vector<32x128xf32>, vector<2x128xf32> -> vector<2x128xf32>
    %90 = arith.addf %89, %15 : vector<2x128xf32>
    %91 = vector.extract_strided_slice %9 {offsets = [2, 0, 0], sizes = [1, 2, 128], strides = [1, 1, 1]} : vector<8x2x128xf32> to vector<1x2x128xf32>
    %92 = vector.shape_cast %91 : vector<1x2x128xf32> to vector<2x128xf32>
    %cst_23 = arith.constant dense<0.000000e+00> : vector<2x128xf32>
    %93 = tpu.matmul %71, %10, %cst_23 {dimension_numbers = #tpu.dot_dimension_numbers<[1], [0], [0], [1], [0, 0, 1, 1], [], []>} : vector<2x32xf32>, vector<32x128xf32>, vector<2x128xf32> -> vector<2x128xf32>
    %94 = arith.addf %92, %93 : vector<2x128xf32>
    %95 = arith.negf %94 : vector<2x128xf32>
    %96 = math.exp %95 : vector<2x128xf32>
    %cst_24 = arith.constant 1.000000e+00 : f32
    %97 = vector.broadcast %cst_24 : f32 to vector<2x128xf32>
    %98 = arith.addf %97, %96 : vector<2x128xf32>
    %99 = arith.divf %97, %98 : vector<2x128xf32>
    %100 = math.tanh %94 : vector<2x128xf32>
    %101 = vector.extract_strided_slice %99 {offsets = [0, 0], sizes = [2, 32], strides = [1, 1]} : vector<2x128xf32> to vector<2x32xf32>
    %102 = vector.extract_strided_slice %99 {offsets = [0, 32], sizes = [2, 32], strides = [1, 1]} : vector<2x128xf32> to vector<2x32xf32>
    %103 = vector.extract_strided_slice %100 {offsets = [0, 64], sizes = [2, 32], strides = [1, 1]} : vector<2x128xf32> to vector<2x32xf32>
    %104 = vector.extract_strided_slice %99 {offsets = [0, 96], sizes = [2, 32], strides = [1, 1]} : vector<2x128xf32> to vector<2x32xf32>
    %105 = arith.mulf %102, %69 : vector<2x32xf32>
    %106 = arith.mulf %101, %103 : vector<2x32xf32>
    %107 = arith.addf %105, %106 : vector<2x32xf32>
    %108 = math.tanh %107 : vector<2x32xf32>
    %109 = arith.mulf %104, %108 : vector<2x32xf32>
    %cst_25 = arith.constant dense<0.000000e+00> : vector<2x128xf32>
    %110 = tpu.matmul %109, %11, %cst_25 {dimension_numbers = #tpu.dot_dimension_numbers<[1], [0], [0], [1], [0, 0, 1, 1], [], []>} : vector<2x32xf32>, vector<32x128xf32>, vector<2x128xf32> -> vector<2x128xf32>
    %111 = arith.addf %110, %90 : vector<2x128xf32>
    %112 = arith.negf %111 : vector<2x128xf32>
    %113 = math.exp %112 : vector<2x128xf32>
    %cst_26 = arith.constant 1.000000e+00 : f32
    %114 = vector.broadcast %cst_26 : f32 to vector<2x128xf32>
    %115 = arith.addf %114, %113 : vector<2x128xf32>
    %116 = arith.divf %114, %115 : vector<2x128xf32>
    %117 = math.tanh %111 : vector<2x128xf32>
    %118 = vector.extract_strided_slice %116 {offsets = [0, 0], sizes = [2, 32], strides = [1, 1]} : vector<2x128xf32> to vector<2x32xf32>
    %119 = vector.extract_strided_slice %116 {offsets = [0, 32], sizes = [2, 32], strides = [1, 1]} : vector<2x128xf32> to vector<2x32xf32>
    %120 = vector.extract_strided_slice %117 {offsets = [0, 64], sizes = [2, 32], strides = [1, 1]} : vector<2x128xf32> to vector<2x32xf32>
    %121 = vector.extract_strided_slice %116 {offsets = [0, 96], sizes = [2, 32], strides = [1, 1]} : vector<2x128xf32> to vector<2x32xf32>
    %122 = arith.mulf %119, %86 : vector<2x32xf32>
    %123 = arith.mulf %118, %120 : vector<2x32xf32>
    %124 = arith.addf %122, %123 : vector<2x32xf32>
    %125 = math.tanh %124 : vector<2x32xf32>
    %126 = arith.mulf %121, %125 : vector<2x32xf32>
    %cst_27 = arith.constant dense<0.000000e+00> : vector<2x128xf32>
    %127 = tpu.matmul %126, %12, %cst_27 {dimension_numbers = #tpu.dot_dimension_numbers<[1], [0], [0], [1], [0, 0, 1, 1], [], []>} : vector<2x32xf32>, vector<32x128xf32>, vector<2x128xf32> -> vector<2x128xf32>
    %128 = arith.addf %127, %15 : vector<2x128xf32>
    %129 = vector.extract_strided_slice %9 {offsets = [3, 0, 0], sizes = [1, 2, 128], strides = [1, 1, 1]} : vector<8x2x128xf32> to vector<1x2x128xf32>
    %130 = vector.shape_cast %129 : vector<1x2x128xf32> to vector<2x128xf32>
    %cst_28 = arith.constant dense<0.000000e+00> : vector<2x128xf32>
    %131 = tpu.matmul %109, %10, %cst_28 {dimension_numbers = #tpu.dot_dimension_numbers<[1], [0], [0], [1], [0, 0, 1, 1], [], []>} : vector<2x32xf32>, vector<32x128xf32>, vector<2x128xf32> -> vector<2x128xf32>
    %132 = arith.addf %130, %131 : vector<2x128xf32>
    %133 = arith.negf %132 : vector<2x128xf32>
    %134 = math.exp %133 : vector<2x128xf32>
    %cst_29 = arith.constant 1.000000e+00 : f32
    %135 = vector.broadcast %cst_29 : f32 to vector<2x128xf32>
    %136 = arith.addf %135, %134 : vector<2x128xf32>
    %137 = arith.divf %135, %136 : vector<2x128xf32>
    %138 = math.tanh %132 : vector<2x128xf32>
    %139 = vector.extract_strided_slice %137 {offsets = [0, 0], sizes = [2, 32], strides = [1, 1]} : vector<2x128xf32> to vector<2x32xf32>
    %140 = vector.extract_strided_slice %137 {offsets = [0, 32], sizes = [2, 32], strides = [1, 1]} : vector<2x128xf32> to vector<2x32xf32>
    %141 = vector.extract_strided_slice %138 {offsets = [0, 64], sizes = [2, 32], strides = [1, 1]} : vector<2x128xf32> to vector<2x32xf32>
    %142 = vector.extract_strided_slice %137 {offsets = [0, 96], sizes = [2, 32], strides = [1, 1]} : vector<2x128xf32> to vector<2x32xf32>
    %143 = arith.mulf %140, %107 : vector<2x32xf32>
    %144 = arith.mulf %139, %141 : vector<2x32xf32>
    %145 = arith.addf %143, %144 : vector<2x32xf32>
    %146 = math.tanh %145 : vector<2x32xf32>
    %147 = arith.mulf %142, %146 : vector<2x32xf32>
    %cst_30 = arith.constant dense<0.000000e+00> : vector<2x128xf32>
    %148 = tpu.matmul %147, %11, %cst_30 {dimension_numbers = #tpu.dot_dimension_numbers<[1], [0], [0], [1], [0, 0, 1, 1], [], []>} : vector<2x32xf32>, vector<32x128xf32>, vector<2x128xf32> -> vector<2x128xf32>
    %149 = arith.addf %148, %128 : vector<2x128xf32>
    %150 = arith.negf %149 : vector<2x128xf32>
    %151 = math.exp %150 : vector<2x128xf32>
    %cst_31 = arith.constant 1.000000e+00 : f32
    %152 = vector.broadcast %cst_31 : f32 to vector<2x128xf32>
    %153 = arith.addf %152, %151 : vector<2x128xf32>
    %154 = arith.divf %152, %153 : vector<2x128xf32>
    %155 = math.tanh %149 : vector<2x128xf32>
    %156 = vector.extract_strided_slice %154 {offsets = [0, 0], sizes = [2, 32], strides = [1, 1]} : vector<2x128xf32> to vector<2x32xf32>
    %157 = vector.extract_strided_slice %154 {offsets = [0, 32], sizes = [2, 32], strides = [1, 1]} : vector<2x128xf32> to vector<2x32xf32>
    %158 = vector.extract_strided_slice %155 {offsets = [0, 64], sizes = [2, 32], strides = [1, 1]} : vector<2x128xf32> to vector<2x32xf32>
    %159 = vector.extract_strided_slice %154 {offsets = [0, 96], sizes = [2, 32], strides = [1, 1]} : vector<2x128xf32> to vector<2x32xf32>
    %160 = arith.mulf %157, %124 : vector<2x32xf32>
    %161 = arith.mulf %156, %158 : vector<2x32xf32>
    %162 = arith.addf %160, %161 : vector<2x32xf32>
    %163 = math.tanh %162 : vector<2x32xf32>
    %164 = arith.mulf %159, %163 : vector<2x32xf32>
    %cst_32 = arith.constant dense<0.000000e+00> : vector<2x128xf32>
    %165 = tpu.matmul %164, %12, %cst_32 {dimension_numbers = #tpu.dot_dimension_numbers<[1], [0], [0], [1], [0, 0, 1, 1], [], []>} : vector<2x32xf32>, vector<32x128xf32>, vector<2x128xf32> -> vector<2x128xf32>
    %166 = arith.addf %165, %15 : vector<2x128xf32>
    %167 = vector.extract_strided_slice %9 {offsets = [4, 0, 0], sizes = [1, 2, 128], strides = [1, 1, 1]} : vector<8x2x128xf32> to vector<1x2x128xf32>
    %168 = vector.shape_cast %167 : vector<1x2x128xf32> to vector<2x128xf32>
    %cst_33 = arith.constant dense<0.000000e+00> : vector<2x128xf32>
    %169 = tpu.matmul %147, %10, %cst_33 {dimension_numbers = #tpu.dot_dimension_numbers<[1], [0], [0], [1], [0, 0, 1, 1], [], []>} : vector<2x32xf32>, vector<32x128xf32>, vector<2x128xf32> -> vector<2x128xf32>
    %170 = arith.addf %168, %169 : vector<2x128xf32>
    %171 = arith.negf %170 : vector<2x128xf32>
    %172 = math.exp %171 : vector<2x128xf32>
    %cst_34 = arith.constant 1.000000e+00 : f32
    %173 = vector.broadcast %cst_34 : f32 to vector<2x128xf32>
    %174 = arith.addf %173, %172 : vector<2x128xf32>
    %175 = arith.divf %173, %174 : vector<2x128xf32>
    %176 = math.tanh %170 : vector<2x128xf32>
    %177 = vector.extract_strided_slice %175 {offsets = [0, 0], sizes = [2, 32], strides = [1, 1]} : vector<2x128xf32> to vector<2x32xf32>
    %178 = vector.extract_strided_slice %175 {offsets = [0, 32], sizes = [2, 32], strides = [1, 1]} : vector<2x128xf32> to vector<2x32xf32>
    %179 = vector.extract_strided_slice %176 {offsets = [0, 64], sizes = [2, 32], strides = [1, 1]} : vector<2x128xf32> to vector<2x32xf32>
    %180 = vector.extract_strided_slice %175 {offsets = [0, 96], sizes = [2, 32], strides = [1, 1]} : vector<2x128xf32> to vector<2x32xf32>
    %181 = arith.mulf %178, %145 : vector<2x32xf32>
    %182 = arith.mulf %177, %179 : vector<2x32xf32>
    %183 = arith.addf %181, %182 : vector<2x32xf32>
    %184 = math.tanh %183 : vector<2x32xf32>
    %185 = arith.mulf %180, %184 : vector<2x32xf32>
    %cst_35 = arith.constant dense<0.000000e+00> : vector<2x128xf32>
    %186 = tpu.matmul %185, %11, %cst_35 {dimension_numbers = #tpu.dot_dimension_numbers<[1], [0], [0], [1], [0, 0, 1, 1], [], []>} : vector<2x32xf32>, vector<32x128xf32>, vector<2x128xf32> -> vector<2x128xf32>
    %187 = arith.addf %186, %166 : vector<2x128xf32>
    %188 = arith.negf %187 : vector<2x128xf32>
    %189 = math.exp %188 : vector<2x128xf32>
    %cst_36 = arith.constant 1.000000e+00 : f32
    %190 = vector.broadcast %cst_36 : f32 to vector<2x128xf32>
    %191 = arith.addf %190, %189 : vector<2x128xf32>
    %192 = arith.divf %190, %191 : vector<2x128xf32>
    %193 = math.tanh %187 : vector<2x128xf32>
    %194 = vector.extract_strided_slice %192 {offsets = [0, 0], sizes = [2, 32], strides = [1, 1]} : vector<2x128xf32> to vector<2x32xf32>
    %195 = vector.extract_strided_slice %192 {offsets = [0, 32], sizes = [2, 32], strides = [1, 1]} : vector<2x128xf32> to vector<2x32xf32>
    %196 = vector.extract_strided_slice %193 {offsets = [0, 64], sizes = [2, 32], strides = [1, 1]} : vector<2x128xf32> to vector<2x32xf32>
    %197 = vector.extract_strided_slice %192 {offsets = [0, 96], sizes = [2, 32], strides = [1, 1]} : vector<2x128xf32> to vector<2x32xf32>
    %198 = arith.mulf %195, %162 : vector<2x32xf32>
    %199 = arith.mulf %194, %196 : vector<2x32xf32>
    %200 = arith.addf %198, %199 : vector<2x32xf32>
    %201 = math.tanh %200 : vector<2x32xf32>
    %202 = arith.mulf %197, %201 : vector<2x32xf32>
    %cst_37 = arith.constant dense<0.000000e+00> : vector<2x128xf32>
    %203 = tpu.matmul %202, %12, %cst_37 {dimension_numbers = #tpu.dot_dimension_numbers<[1], [0], [0], [1], [0, 0, 1, 1], [], []>} : vector<2x32xf32>, vector<32x128xf32>, vector<2x128xf32> -> vector<2x128xf32>
    %204 = arith.addf %203, %15 : vector<2x128xf32>
    %205 = vector.extract_strided_slice %9 {offsets = [5, 0, 0], sizes = [1, 2, 128], strides = [1, 1, 1]} : vector<8x2x128xf32> to vector<1x2x128xf32>
    %206 = vector.shape_cast %205 : vector<1x2x128xf32> to vector<2x128xf32>
    %cst_38 = arith.constant dense<0.000000e+00> : vector<2x128xf32>
    %207 = tpu.matmul %185, %10, %cst_38 {dimension_numbers = #tpu.dot_dimension_numbers<[1], [0], [0], [1], [0, 0, 1, 1], [], []>} : vector<2x32xf32>, vector<32x128xf32>, vector<2x128xf32> -> vector<2x128xf32>
    %208 = arith.addf %206, %207 : vector<2x128xf32>
    %209 = arith.negf %208 : vector<2x128xf32>
    %210 = math.exp %209 : vector<2x128xf32>
    %cst_39 = arith.constant 1.000000e+00 : f32
    %211 = vector.broadcast %cst_39 : f32 to vector<2x128xf32>
    %212 = arith.addf %211, %210 : vector<2x128xf32>
    %213 = arith.divf %211, %212 : vector<2x128xf32>
    %214 = math.tanh %208 : vector<2x128xf32>
    %215 = vector.extract_strided_slice %213 {offsets = [0, 0], sizes = [2, 32], strides = [1, 1]} : vector<2x128xf32> to vector<2x32xf32>
    %216 = vector.extract_strided_slice %213 {offsets = [0, 32], sizes = [2, 32], strides = [1, 1]} : vector<2x128xf32> to vector<2x32xf32>
    %217 = vector.extract_strided_slice %214 {offsets = [0, 64], sizes = [2, 32], strides = [1, 1]} : vector<2x128xf32> to vector<2x32xf32>
    %218 = vector.extract_strided_slice %213 {offsets = [0, 96], sizes = [2, 32], strides = [1, 1]} : vector<2x128xf32> to vector<2x32xf32>
    %219 = arith.mulf %216, %183 : vector<2x32xf32>
    %220 = arith.mulf %215, %217 : vector<2x32xf32>
    %221 = arith.addf %219, %220 : vector<2x32xf32>
    %222 = math.tanh %221 : vector<2x32xf32>
    %223 = arith.mulf %218, %222 : vector<2x32xf32>
    %cst_40 = arith.constant dense<0.000000e+00> : vector<2x128xf32>
    %224 = tpu.matmul %223, %11, %cst_40 {dimension_numbers = #tpu.dot_dimension_numbers<[1], [0], [0], [1], [0, 0, 1, 1], [], []>} : vector<2x32xf32>, vector<32x128xf32>, vector<2x128xf32> -> vector<2x128xf32>
    %225 = arith.addf %224, %204 : vector<2x128xf32>
    %226 = arith.negf %225 : vector<2x128xf32>
    %227 = math.exp %226 : vector<2x128xf32>
    %cst_41 = arith.constant 1.000000e+00 : f32
    %228 = vector.broadcast %cst_41 : f32 to vector<2x128xf32>
    %229 = arith.addf %228, %227 : vector<2x128xf32>
    %230 = arith.divf %228, %229 : vector<2x128xf32>
    %231 = math.tanh %225 : vector<2x128xf32>
    %232 = vector.extract_strided_slice %230 {offsets = [0, 0], sizes = [2, 32], strides = [1, 1]} : vector<2x128xf32> to vector<2x32xf32>
    %233 = vector.extract_strided_slice %230 {offsets = [0, 32], sizes = [2, 32], strides = [1, 1]} : vector<2x128xf32> to vector<2x32xf32>
    %234 = vector.extract_strided_slice %231 {offsets = [0, 64], sizes = [2, 32], strides = [1, 1]} : vector<2x128xf32> to vector<2x32xf32>
    %235 = vector.extract_strided_slice %230 {offsets = [0, 96], sizes = [2, 32], strides = [1, 1]} : vector<2x128xf32> to vector<2x32xf32>
    %236 = arith.mulf %233, %200 : vector<2x32xf32>
    %237 = arith.mulf %232, %234 : vector<2x32xf32>
    %238 = arith.addf %236, %237 : vector<2x32xf32>
    %239 = math.tanh %238 : vector<2x32xf32>
    %240 = arith.mulf %235, %239 : vector<2x32xf32>
    %cst_42 = arith.constant dense<0.000000e+00> : vector<2x128xf32>
    %241 = tpu.matmul %240, %12, %cst_42 {dimension_numbers = #tpu.dot_dimension_numbers<[1], [0], [0], [1], [0, 0, 1, 1], [], []>} : vector<2x32xf32>, vector<32x128xf32>, vector<2x128xf32> -> vector<2x128xf32>
    %242 = arith.addf %241, %15 : vector<2x128xf32>
    %243 = vector.extract_strided_slice %9 {offsets = [6, 0, 0], sizes = [1, 2, 128], strides = [1, 1, 1]} : vector<8x2x128xf32> to vector<1x2x128xf32>
    %244 = vector.shape_cast %243 : vector<1x2x128xf32> to vector<2x128xf32>
    %cst_43 = arith.constant dense<0.000000e+00> : vector<2x128xf32>
    %245 = tpu.matmul %223, %10, %cst_43 {dimension_numbers = #tpu.dot_dimension_numbers<[1], [0], [0], [1], [0, 0, 1, 1], [], []>} : vector<2x32xf32>, vector<32x128xf32>, vector<2x128xf32> -> vector<2x128xf32>
    %246 = arith.addf %244, %245 : vector<2x128xf32>
    %247 = arith.negf %246 : vector<2x128xf32>
    %248 = math.exp %247 : vector<2x128xf32>
    %cst_44 = arith.constant 1.000000e+00 : f32
    %249 = vector.broadcast %cst_44 : f32 to vector<2x128xf32>
    %250 = arith.addf %249, %248 : vector<2x128xf32>
    %251 = arith.divf %249, %250 : vector<2x128xf32>
    %252 = math.tanh %246 : vector<2x128xf32>
    %253 = vector.extract_strided_slice %251 {offsets = [0, 0], sizes = [2, 32], strides = [1, 1]} : vector<2x128xf32> to vector<2x32xf32>
    %254 = vector.extract_strided_slice %251 {offsets = [0, 32], sizes = [2, 32], strides = [1, 1]} : vector<2x128xf32> to vector<2x32xf32>
    %255 = vector.extract_strided_slice %252 {offsets = [0, 64], sizes = [2, 32], strides = [1, 1]} : vector<2x128xf32> to vector<2x32xf32>
    %256 = vector.extract_strided_slice %251 {offsets = [0, 96], sizes = [2, 32], strides = [1, 1]} : vector<2x128xf32> to vector<2x32xf32>
    %257 = arith.mulf %254, %221 : vector<2x32xf32>
    %258 = arith.mulf %253, %255 : vector<2x32xf32>
    %259 = arith.addf %257, %258 : vector<2x32xf32>
    %260 = math.tanh %259 : vector<2x32xf32>
    %261 = arith.mulf %256, %260 : vector<2x32xf32>
    %cst_45 = arith.constant dense<0.000000e+00> : vector<2x128xf32>
    %262 = tpu.matmul %261, %11, %cst_45 {dimension_numbers = #tpu.dot_dimension_numbers<[1], [0], [0], [1], [0, 0, 1, 1], [], []>} : vector<2x32xf32>, vector<32x128xf32>, vector<2x128xf32> -> vector<2x128xf32>
    %263 = arith.addf %262, %242 : vector<2x128xf32>
    %264 = arith.negf %263 : vector<2x128xf32>
    %265 = math.exp %264 : vector<2x128xf32>
    %cst_46 = arith.constant 1.000000e+00 : f32
    %266 = vector.broadcast %cst_46 : f32 to vector<2x128xf32>
    %267 = arith.addf %266, %265 : vector<2x128xf32>
    %268 = arith.divf %266, %267 : vector<2x128xf32>
    %269 = math.tanh %263 : vector<2x128xf32>
    %270 = vector.extract_strided_slice %268 {offsets = [0, 0], sizes = [2, 32], strides = [1, 1]} : vector<2x128xf32> to vector<2x32xf32>
    %271 = vector.extract_strided_slice %268 {offsets = [0, 32], sizes = [2, 32], strides = [1, 1]} : vector<2x128xf32> to vector<2x32xf32>
    %272 = vector.extract_strided_slice %269 {offsets = [0, 64], sizes = [2, 32], strides = [1, 1]} : vector<2x128xf32> to vector<2x32xf32>
    %273 = vector.extract_strided_slice %268 {offsets = [0, 96], sizes = [2, 32], strides = [1, 1]} : vector<2x128xf32> to vector<2x32xf32>
    %274 = arith.mulf %271, %238 : vector<2x32xf32>
    %275 = arith.mulf %270, %272 : vector<2x32xf32>
    %276 = arith.addf %274, %275 : vector<2x32xf32>
    %277 = math.tanh %276 : vector<2x32xf32>
    %278 = arith.mulf %273, %277 : vector<2x32xf32>
    %cst_47 = arith.constant dense<0.000000e+00> : vector<2x128xf32>
    %279 = tpu.matmul %278, %12, %cst_47 {dimension_numbers = #tpu.dot_dimension_numbers<[1], [0], [0], [1], [0, 0, 1, 1], [], []>} : vector<2x32xf32>, vector<32x128xf32>, vector<2x128xf32> -> vector<2x128xf32>
    %280 = arith.addf %279, %15 : vector<2x128xf32>
    %281 = vector.extract_strided_slice %9 {offsets = [7, 0, 0], sizes = [1, 2, 128], strides = [1, 1, 1]} : vector<8x2x128xf32> to vector<1x2x128xf32>
    %282 = vector.shape_cast %281 : vector<1x2x128xf32> to vector<2x128xf32>
    %cst_48 = arith.constant dense<0.000000e+00> : vector<2x128xf32>
    %283 = tpu.matmul %261, %10, %cst_48 {dimension_numbers = #tpu.dot_dimension_numbers<[1], [0], [0], [1], [0, 0, 1, 1], [], []>} : vector<2x32xf32>, vector<32x128xf32>, vector<2x128xf32> -> vector<2x128xf32>
    %284 = arith.addf %282, %283 : vector<2x128xf32>
    %285 = arith.negf %284 : vector<2x128xf32>
    %286 = math.exp %285 : vector<2x128xf32>
    %cst_49 = arith.constant 1.000000e+00 : f32
    %287 = vector.broadcast %cst_49 : f32 to vector<2x128xf32>
    %288 = arith.addf %287, %286 : vector<2x128xf32>
    %289 = arith.divf %287, %288 : vector<2x128xf32>
    %290 = math.tanh %284 : vector<2x128xf32>
    %291 = vector.extract_strided_slice %289 {offsets = [0, 0], sizes = [2, 32], strides = [1, 1]} : vector<2x128xf32> to vector<2x32xf32>
    %292 = vector.extract_strided_slice %289 {offsets = [0, 32], sizes = [2, 32], strides = [1, 1]} : vector<2x128xf32> to vector<2x32xf32>
    %293 = vector.extract_strided_slice %290 {offsets = [0, 64], sizes = [2, 32], strides = [1, 1]} : vector<2x128xf32> to vector<2x32xf32>
    %294 = vector.extract_strided_slice %289 {offsets = [0, 96], sizes = [2, 32], strides = [1, 1]} : vector<2x128xf32> to vector<2x32xf32>
    %295 = arith.mulf %292, %259 : vector<2x32xf32>
    %296 = arith.mulf %291, %293 : vector<2x32xf32>
    %297 = arith.addf %295, %296 : vector<2x32xf32>
    %298 = math.tanh %297 : vector<2x32xf32>
    %299 = arith.mulf %294, %298 : vector<2x32xf32>
    %cst_50 = arith.constant dense<0.000000e+00> : vector<2x128xf32>
    %300 = tpu.matmul %299, %11, %cst_50 {dimension_numbers = #tpu.dot_dimension_numbers<[1], [0], [0], [1], [0, 0, 1, 1], [], []>} : vector<2x32xf32>, vector<32x128xf32>, vector<2x128xf32> -> vector<2x128xf32>
    %301 = arith.addf %300, %280 : vector<2x128xf32>
    %302 = arith.negf %301 : vector<2x128xf32>
    %303 = math.exp %302 : vector<2x128xf32>
    %cst_51 = arith.constant 1.000000e+00 : f32
    %304 = vector.broadcast %cst_51 : f32 to vector<2x128xf32>
    %305 = arith.addf %304, %303 : vector<2x128xf32>
    %306 = arith.divf %304, %305 : vector<2x128xf32>
    %307 = math.tanh %301 : vector<2x128xf32>
    %308 = vector.extract_strided_slice %306 {offsets = [0, 0], sizes = [2, 32], strides = [1, 1]} : vector<2x128xf32> to vector<2x32xf32>
    %309 = vector.extract_strided_slice %306 {offsets = [0, 32], sizes = [2, 32], strides = [1, 1]} : vector<2x128xf32> to vector<2x32xf32>
    %310 = vector.extract_strided_slice %307 {offsets = [0, 64], sizes = [2, 32], strides = [1, 1]} : vector<2x128xf32> to vector<2x32xf32>
    %311 = vector.extract_strided_slice %306 {offsets = [0, 96], sizes = [2, 32], strides = [1, 1]} : vector<2x128xf32> to vector<2x32xf32>
    %312 = arith.mulf %309, %276 : vector<2x32xf32>
    %313 = arith.mulf %308, %310 : vector<2x32xf32>
    %314 = arith.addf %312, %313 : vector<2x32xf32>
    %315 = math.tanh %314 : vector<2x32xf32>
    %316 = arith.mulf %311, %315 : vector<2x32xf32>
    %c0_52 = arith.constant 0 : index
    %c0_53 = arith.constant 0 : index
    %317 = vector.load %arg7[%c0_52, %c0_53] : memref<32x1xf32, #tpu.memory_space<vmem>>, vector<32x1xf32>
    %cst_54 = arith.constant dense<0.000000e+00> : vector<2x1xf32>
    %318 = tpu.matmul %316, %317, %cst_54 {dimension_numbers = #tpu.dot_dimension_numbers<[1], [0], [0], [1], [0, 0, 1, 1], [], []>} : vector<2x32xf32>, vector<32x1xf32>, vector<2x1xf32> -> vector<2x1xf32>
    %c0_55 = arith.constant 0 : index
    %c0_56 = arith.constant 0 : index
    %319 = vector.load %arg8[%c0_55, %c0_56] : memref<1x1xf32, #tpu.memory_space<vmem>>, vector<1x1xf32>
    %320 = vector.broadcast %319 : vector<1x1xf32> to vector<2x1xf32>
    %321 = arith.addf %318, %320 : vector<2x1xf32>
    %c0_57 = arith.constant 0 : index
    %c0_58 = arith.constant 0 : index
    %322 = vector.load %arg9[%c0_57, %c0_58] : memref<2x1xf32, #tpu.memory_space<vmem>>, vector<2x1xf32>
    tpu.vector_store %arg9[%c0_57, %c0_58], %321 {strides = array<i32>} : memref<2x1xf32, #tpu.memory_space<vmem>>, vector<2x1xf32>,
    return
  }
}

</mosaic_0001>

<bundles_post_ra>
// kernel: tpu_custom_call.1
= control target key start
LH: loop header
LB: loop body
LE: loop exit
PB: predicated region body
PF: predicated region fallthrough
CT: control target
= control target key end

     0   :  { %s3447_s0 = inlined_call_operand.vmem [shape: f32[8,2,1], index: 0, kind: input, shape index: {}]   ;;  %s3448_s1 = inlined_call_operand.vmem [shape: f32[1,128], index: 1, kind: input, shape index: {}]   ;;  %s3449_s2 = inlined_call_operand.vmem [shape: f32[1,128], index: 2, kind: input, shape index: {}]   ;;  %s3450_s3 = inlined_call_operand.vmem [shape: f32[32,128], index: 3, kind: input, shape index: {}]   ;;  %s3451_s4 = inlined_call_operand.vmem [shape: f32[32,128], index: 4, kind: input, shape index: {}]   ;;  %s3452_s5 = inlined_call_operand.hbm [shape: f32[32,128], index: 5, kind: input, shape index: {}]   ;;  %s3453_s6 = inlined_call_operand.vmem [shape: f32[1,128], index: 6, kind: input, shape index: {}]   ;;  %s3454_s7 = inlined_call_operand.vmem [shape: f32[32,1], index: 7, kind: input, shape index: {}]   ;;  %s3455_s8 = inlined_call_operand.<no memory space> [shape: f32[1,1], index: 8, kind: input, shape index: {}]   ;;  %s3456_s9 = inlined_call_operand.vmem [shape: f32[2,1], index: 9, kind: output, shape index: {}]  }
   0x1   :  { %v14_v0 = vstv %s3455_s8 }
   0x2   :  { %15 = vst [vmem:[#allocation2] sm:$0x1] %v14_v0 }
   0x3   :  { %16 = vsyncpa [#allocation4], 0  ;;  %s2980_s11 = smov [#allocation3]   ;;  %s2956_s15 = scalar_lea.hbm %s3452_s5, 512 }
   0x4   :  { %s32_s12 = sshll.u32 %s2980_s11, 4  ;;  %p2957_p0 = scmp.ne.s32.totalorder %s3452_s5, %s2956_s15  ;;  %s33_s12 = int_to_ptr.vmem [resolvable:$true] %s32_s12 }
   0x5   :  { %p2960_p1 = scmp.lt.u32.totalorder %s2956_s15, %s3452_s5 }
   0x7   :  { %p2962_p2 = pnand %p2960_p1, %p2957_p0 }
   0x9   :  { %2965 = shalt.err (!%p2962_p2)
}
   0xa   :  { %s2966_s8 = scalar_lea.vmem %s33_s12, 512  ;;  %p2971_p4 = scmp.lt.s32.totalorder %s33_s12, %s33_s12 }
   0xb   :  { %p2967_p3 = scmp.ne.s32.totalorder %s33_s12, %s2966_s8  ;;  %p2972_p5 = scmp.lt.s32.totalorder %s2966_s8, %s2966_s8 }
   0xd   :  { %p2973_p6 = por %p2972_p5, %p2971_p4 }
   0xf   :  { %p2974_p7 = pnand %p2973_p6, %p2967_p3 }
  0x11   :  { %2977 = shalt.err (!%p2974_p7)
}
  0x12   :  { %s2981_s20 = smov 128   ;;  %s2982_s21 = smov 8  }
  0x13   :  { %38 = dma.hbm_to_vmem [thread:$0]  %s3452_s5, 512, %s33_s12, [#allocation4], %s2981_s20, %s2981_s20, %s2982_s21  }
  0x14   :  { %2978 = dma.done.wait [#allocation4], 512  }
  0x15   :  { %2979 = vsyncadd [#allocation4], 4294966784  ;;  %v2983_v1 = vmov 0   ;;  %v48_v2 = vld [vmem:[%s3447_s0] sm:$0x3]  ;;  %s2984_s5 = smov 64  }
  0x16   :  { %2824 = vset.pattern.permute.xlu0 %v2983_v1  ;;  %2825 = vset.pattern.permute.xlu1 %v2983_v1  ;;  %v3060_v3 = vld [vmem:[%s3448_s1] ss:$0 sm:$0xff]  ;;  %s2985_s30 = smov 32   ;;  %v131_v19 = vld [vmem:[%s3451_s4 + $0x8] sm:$0xff]  ;;  %v132_v20 = vld [vmem:[%s3451_s4 + $0x10] sm:$0xff]  ;;  %v2986_v21 = vmov 0.0|0.0  }
  0x17   :  { %59 = vperm.xlu0 %2824, %v48_v2   ;;  %v3065_v4 = vld [vmem:[%s3449_s2] ss:$0 sm:$0xff]  ;;  %2656 = vmatprep.subr.bf16.mxu0 %v2986_v21  ;;  %v133_v23 = vld [vmem:[%s3451_s4 + $0x18] sm:$0xff]  ;;  %vm2987_vm0 = vmmov 0   ;;  %v2988_v24 = vmov 0.0   ;;  %v127_v31 = vld [vmem:[%s3450_s3 + $0x8] sm:$0xff] }
  0x18   :  { %v130_v18 = vld [vmem:[%s3451_s4] sm:$0xff]  ;;  %2411 = vmatprep.mubr.msk.f32.mxu0 %vm2987_vm0, %v2988_v24  ;;  %2662 = vmatprep.subr.bf16.mxu1 %v2986_v21  ;;  %v3095_v25 = vpack.c.bf16 %v133_v23, %v132_v20  ;;  %vm172_vm1 = vcmask 261120   ;;  %v128_v33 = vld [vmem:[%s3450_s3 + $0x10] sm:$0xff]  ;;  %v129_v34 = vld [vmem:[%s3450_s3 + $0x18] sm:$0xff]  ;;  %vm2238_vm2 = vcmask 1024  }
  0x19   :  { %v3084_v22 = vpack.c.bf16 %v131_v19, %v130_v18  ;;  %2422 = vmatprep.mubr.msk.f32.mxu1 %vm2987_vm0, %v2988_v24  ;;  %v49_v27 = vld [vmem:[%s3447_s0 + $0x2] sm:$0x3]  ;;  %v3121_v36 = vpack.c.bf16 %v129_v34, %v128_v33  ;;  %v3134_v37 = vld [vmem:[%s3453_s6] ss:$0 sm:$0xff] }
  0x1a   :  { %v126_v30 = vld [vmem:[%s3450_s3] sm:$0xff] }
  0x1b   :  { %2658 = vmatpush3.bf16.msra.mxu0 %v3084_v22  ;;  %v3111_v32 = vpack.c.bf16 %v127_v31, %v126_v30 }
  0x1c   :  { %2659 = vmatprep.subr.bf16.mxu0 %v2986_v21 }
  0x1f   :  { %2661 = vmatpush3.bf16.msra.mxu0 %v3095_v25 }
  0x20   :  { %2668 = vmatprep.subr.bf16.mxu0 %v2986_v21 }
  0x96   :  { %v60_v5 = vpop.permute.xlu0 %59 }
  0x97   :  { %v103_v6 = vmul.f32 %v3060_v3, %v60_v5  ;;  %v134_v5 = vld [vmem:[#allocation3] sm:$0xff] }
  0x99   :  { %v118_v7 = vadd.f32 %v3065_v4, %v103_v6  ;;  %v135_v6 = vld [vmem:[#allocation3 + $0x8] sm:$0xff] }
  0x9b   :  { %2826 = vtanh.f32 %v118_v7  ;;  %v2248_v9 = vmul.f32 -1.442695, %v118_v7  ;;  %v136_v7 = vld [vmem:[#allocation3 + $0x10] sm:$0xff] }
  0x9d   :  { %2828 = vpow2.f32 %v2248_v9  ;;  %v137_v9 = vld [vmem:[#allocation3 + $0x18] sm:$0xff] }
  0xa5   :  { %v2827_v8 = vpop.eup %2826 }
  0xa6   :  { %154 = vrot.lane.b32.xlu0 %v2827_v8, %s2984_s5  ;;  %v3150_v8 = vpack.c.bf16 %v135_v6, %v134_v5 }
  0xa7   :  { %v2829_v10 = vpop.eup %2828 }
  0xa8   :  { %v148_v11 = vadd.f32 1.0, %v2829_v10  ;;  %2664 = vmatpush3.bf16.msra.mxu1 %v3150_v8 }
  0xa9   :  { %2665 = vmatprep.subr.bf16.mxu1 %v2986_v21 }
  0xaa   :  { %2830 = vrcp.f32 %v148_v11  ;;  %v3154_v11 = vpack.c.bf16 %v137_v9, %v136_v7 }
  0xac   :  { %2667 = vmatpush3.bf16.msra.mxu1 %v3154_v11 }
  0xad   :  { %2674 = vmatprep.subr.bf16.mxu1 %v2986_v21 }
  0xb4   :  { %v2831_v12 = vpop.eup %2830 }
  0xb5   :  { %v152_v15 = vmul.f32 0.0, %v2831_v12 }
 0x118   :  { %v155_v13 = vpop.permute.xlu0 %154 }
 0x119   :  { %v157_v14 = vmul.f32 %v2831_v12, %v155_v13 }
 0x11b   :  { %159 = vrot.lane.b32.xlu1 %v157_v14, %s2985_s30 }
 0x18d   :  { %v160_v16 = vpop.permute.xlu1 %159 }
 0x18e   :  { %v3071_v17 = vadd.f32 %v160_v16, %v152_v15  ;;  %v50_v15 = vld [vmem:[%s3447_s0 + $0x4] sm:$0x3] }
 0x190   :  { %2832 = vtanh.f32 %v3071_v17 }
 0x19a   :  { %v2833_v26 = vpop.eup %2832 }
 0x19b   :  { %165 = vrot.lane.b32.xlu1 %v2833_v26, %s2984_s5 }
 0x19f   :  { %64 = vperm.xlu1 %2825, %v49_v27  }
 0x20d   :  { %v166_v28 = vpop.permute.xlu1 %165 }
 0x20e   :  { %v168_v29 = vmul.f32 %v2831_v12, %v166_v28 }
 0x210   :  { %170 = vrot.lane.b32.xlu0 %v168_v29, %s2985_s30 }
 0x21e   :  { %v65_v38 = vpop.permute.xlu1 %64 }
 0x21f   :  { %v104_v42 = vmul.f32 %v3060_v3, %v65_v38 }
 0x221   :  { %v119_v43 = vadd.f32 %v3065_v4, %v104_v42 }
 0x282   :  { %v171_v35 = vpop.permute.xlu0 %170 }
 0x283   :  { %2412 = vmatmul.mubr.msk.f32.vlgmr.msra.gmra.mrb[0].mxu0 %vm172_vm1, %v171_v35 }
 0x284   :  { %2670 = vmatpush3.bf16.msra.mxu0 %v3111_v32  ;;  %2433 = vmatprep.mubr.msk.f32.mxu0 %vm2987_vm0, %v2988_v24 }
 0x285   :  { %2671 = vmatprep.subr.bf16.mxu0 %v2986_v21 }
 0x288   :  { %2673 = vmatpush3.bf16.msra.mxu0 %v3121_v36 }
 0x289   :  { %2680 = vmatprep.subr.bf16.mxu0 %v2986_v21 }
 0x28b   :  { %2434 = vmatmul.mubr.msk.f32.vlgmr.msra.gmra.mrb[2].mxu0 %vm172_vm1, %v171_v35 }
 0x28c   :  { %2455 = vmatprep.mubr.msk.f32.mxu0 %vm2987_vm0, %v2988_v24  ;;  %2682 = vmatpush3.bf16.msra.mxu0 %v3150_v8 }
 0x28d   :  { %2683 = vmatprep.subr.bf16.mxu0 %v2986_v21 }
 0x290   :  { %2685 = vmatpush3.bf16.msra.mxu0 %v3154_v11 }
 0x291   :  { %2692 = vmatprep.subr.bf16.mxu0 %v2986_v21 }
 0x356   :  { %v241_v39 = vpop.f32.mrb[0].mxu0 }
 0x357   :  { %v242_v40 = vadd.f32 %v3134_v37, %v241_v39  ;;  %v2413_v41 = vpop.f32.mrb[1].mxu0 }
 0x359   :  { %2834 = vtanh.f32 %v242_v40  ;;  %v2250_v49 = vmul.f32 -1.442695, %v242_v40 }
 0x35e   :  { %v410_v44 = vpop.f32.mrb[2].mxu0 }
 0x35f   :  { %v414_v45 = vadd.f32 %v410_v44, %v119_v43  ;;  %v2435_v46 = vpop.f32.mrb[3].mxu0 }
 0x361   :  { %2836 = vtanh.f32 %v414_v45  ;;  %v2253_v50 = vmul.f32 -1.442695, %v414_v45 }
 0x362   :  { %2838 = vpow2.f32 %v2250_v49 }
 0x363   :  { %v2835_v47 = vpop.eup %2834  ;;  %2840 = vpow2.f32 %v2253_v50 }
 0x364   :  { %254 = vrot.lane.b32.xlu0 %v2835_v47, %s2984_s5 }
 0x36b   :  { %v2837_v48 = vpop.eup %2836 }
 0x36c   :  { %424 = vrot.lane.b32.xlu1 %v2837_v48, %s2984_s5  ;;  %v2839_v51 = vpop.eup %2838 }
 0x36d   :  { %v248_v52 = vadd.f32 1.0, %v2839_v51  ;;  %v2841_v53 = vpop.eup %2840 }
 0x36e   :  { %v418_v54 = vadd.f32 1.0, %v2841_v53 }
 0x36f   :  { %2842 = vrcp.f32 %v248_v52 }
 0x370   :  { %2844 = vrcp.f32 %v418_v54 }
 0x379   :  { %v2843_v55 = vpop.eup %2842 }
 0x37a   :  { %v2845_v58 = vpop.eup %2844  ;;  %v252_v61 = vmul.f32 0.0, %v2843_v55 }
 0x37b   :  { %v422_v0 = vmul.f32 %v2845_v58, %v3071_v17 }
 0x3d6   :  { %v255_v56 = vpop.permute.xlu0 %254 }
 0x3d7   :  { %v257_v57 = vmul.f32 %v2843_v55, %v255_v56 }
 0x3d9   :  { %259 = vrot.lane.b32.xlu0 %v257_v57, %s2985_s30 }
 0x3de   :  { %v425_v59 = vpop.permute.xlu1 %424 }
 0x3df   :  { %v427_v60 = vmul.f32 %v2845_v58, %v425_v59 }
 0x3e1   :  { %429 = vrot.lane.b32.xlu1 %v427_v60, %s2985_s30  ;;  %v51_v60 = vld [vmem:[%s3447_s0 + $0x6] sm:$0x3] }
 0x44b   :  { %v260_v62 = vpop.permute.xlu0 %259 }
 0x44c   :  { %v3143_v63 = vadd.f32 %v260_v62, %v252_v61 }
 0x44e   :  { %2846 = vtanh.f32 %v3143_v63 }
 0x453   :  { %v430_v1 = vpop.permute.xlu1 %429 }
 0x454   :  { %v3147_v2 = vadd.f32 %v430_v1, %v422_v0 }
 0x456   :  { %2848 = vtanh.f32 %v3147_v2 }
 0x458   :  { %v2847_v10 = vpop.eup %2846 }
 0x459   :  { %265 = vrot.lane.b32.xlu0 %v2847_v10, %s2984_s5 }
 0x460   :  { %v2849_v12 = vpop.eup %2848 }
 0x461   :  { %435 = vrot.lane.b32.xlu1 %v2849_v12, %s2984_s5 }
 0x4cb   :  { %v266_v13 = vpop.permute.xlu0 %265 }
 0x4cc   :  { %v268_v14 = vmul.f32 %v2843_v55, %v266_v13 }
 0x4ce   :  { %270 = vrot.lane.b32.xlu0 %v268_v14, %s2985_s30 }
 0x4d2   :  { %69 = vperm.xlu0 %2824, %v50_v15  }
 0x4d3   :  { %v436_v16 = vpop.permute.xlu1 %435 }
 0x4d4   :  { %v438_v17 = vmul.f32 %v2845_v58, %v436_v16 }
 0x4d6   :  { %440 = vrot.lane.b32.xlu1 %v438_v17, %s2985_s30 }
 0x540   :  { %v271_v18 = vpop.permute.xlu0 %270 }
 0x541   :  { %2423 = vmatmul.mubr.msk.f32.vlgmr.msra.gmra.mrb[0].mxu1 %vm172_vm1, %v271_v18 }
 0x542   :  { %2676 = vmatpush3.bf16.msra.mxu1 %v3084_v22  ;;  %2444 = vmatprep.mubr.msk.f32.mxu1 %vm2987_vm0, %v2988_v24 }
 0x543   :  { %2677 = vmatprep.subr.bf16.mxu1 %v2986_v21 }
 0x546   :  { %2679 = vmatpush3.bf16.msra.mxu1 %v3095_v25 }
 0x547   :  { %2686 = vmatprep.subr.bf16.mxu1 %v2986_v21 }
 0x548   :  { %v441_v19 = vpop.permute.xlu1 %440 }
 0x549   :  { %2445 = vmatmul.mubr.msk.f32.vlgmr.msra.gmra.mrb[0].mxu1 %vm172_vm1, %v441_v19 }
 0x54a   :  { %2688 = vmatpush3.bf16.msra.mxu1 %v3111_v32  ;;  %2466 = vmatprep.mubr.msk.f32.mxu1 %vm2987_vm0, %v2988_v24 }
 0x54b   :  { %2689 = vmatprep.subr.bf16.mxu1 %v2986_v21 }
 0x54e   :  { %2691 = vmatpush3.bf16.msra.mxu1 %v3121_v36 }
 0x54f   :  { %2698 = vmatprep.subr.bf16.mxu1 %v2986_v21 }
 0x551   :  { %2467 = vmatmul.mubr.msk.f32.vlgmr.msra.gmra.mrb[2].mxu1 %vm172_vm1, %v441_v19  ;;  %v70_v20 = vpop.permute.xlu0 %69 }
 0x552   :  { %2700 = vmatpush3.bf16.msra.mxu1 %v3150_v8  ;;  %2488 = vmatprep.mubr.msk.f32.mxu1 %vm2987_vm0, %v2988_v24  ;;  %v105_v28 = vmul.f32 %v3060_v3, %v70_v20 }
 0x553   :  { %2701 = vmatprep.subr.bf16.mxu1 %v2986_v21 }
 0x554   :  { %v120_v29 = vadd.f32 %v3065_v4, %v105_v28 }
 0x556   :  { %2703 = vmatpush3.bf16.msra.mxu1 %v3154_v11 }
 0x557   :  { %2710 = vmatprep.subr.bf16.mxu1 %v2986_v21 }
 0x61c   :  { %v510_v23 = vpop.f32.mrb[0].mxu1 }
 0x61d   :  { %v2794_v26 = vadd.f32 %v3134_v37, %v510_v23  ;;  %v2446_v27 = vpop.f32.mrb[1].mxu1 }
 0x61f   :  { %2850 = vtanh.f32 %v2794_v26  ;;  %v2255_v38 = vmul.f32 -1.442695, %v2794_v26 }
 0x624   :  { %v679_v30 = vpop.f32.mrb[2].mxu1 }
 0x625   :  { %v683_v31 = vadd.f32 %v679_v30, %v120_v29  ;;  %v2468_v33 = vpop.f32.mrb[3].mxu1 }
 0x627   :  { %2852 = vtanh.f32 %v683_v31  ;;  %v2258_v39 = vmul.f32 -1.442695, %v683_v31 }
 0x628   :  { %2854 = vpow2.f32 %v2255_v38 }
 0x629   :  { %v2851_v34 = vpop.eup %2850  ;;  %2856 = vpow2.f32 %v2258_v39 }
 0x62a   :  { %523 = vrot.lane.b32.xlu1 %v2851_v34, %s2984_s5 }
 0x631   :  { %v2853_v35 = vpop.eup %2852 }
 0x632   :  { %693 = vrot.lane.b32.xlu0 %v2853_v35, %s2984_s5  ;;  %v2855_v40 = vpop.eup %2854 }
 0x633   :  { %v517_v41 = vadd.f32 1.0, %v2855_v40  ;;  %v2857_v42 = vpop.eup %2856 }
 0x634   :  { %v687_v43 = vadd.f32 1.0, %v2857_v42 }
 0x635   :  { %2858 = vrcp.f32 %v517_v41 }
 0x636   :  { %2860 = vrcp.f32 %v687_v43 }
 0x63f   :  { %v2859_v44 = vpop.eup %2858 }
 0x640   :  { %v2861_v47 = vpop.eup %2860  ;;  %v521_v50 = vmul.f32 %v2859_v44, %v3143_v63 }
 0x641   :  { %v691_v53 = vmul.f32 %v2861_v47, %v3147_v2 }
 0x69c   :  { %v524_v45 = vpop.permute.xlu1 %523 }
 0x69d   :  { %v526_v46 = vmul.f32 %v2859_v44, %v524_v45  ;;  %v52_v45 = vld [vmem:[%s3447_s0 + $0x8] sm:$0x3] }
 0x69f   :  { %528 = vrot.lane.b32.xlu1 %v526_v46, %s2985_s30 }
 0x6a4   :  { %v694_v48 = vpop.permute.xlu0 %693 }
 0x6a5   :  { %v696_v49 = vmul.f32 %v2861_v47, %v694_v48 }
 0x6a7   :  { %698 = vrot.lane.b32.xlu0 %v696_v49, %s2985_s30 }
 0x711   :  { %v529_v51 = vpop.permute.xlu1 %528 }
 0x712   :  { %v3198_v52 = vadd.f32 %v529_v51, %v521_v50 }
 0x714   :  { %2862 = vtanh.f32 %v3198_v52 }
 0x719   :  { %v699_v54 = vpop.permute.xlu0 %698 }
 0x71a   :  { %v3202_v55 = vadd.f32 %v699_v54, %v691_v53 }
 0x71c   :  { %2864 = vtanh.f32 %v3202_v55 }
 0x71e   :  { %v2863_v56 = vpop.eup %2862 }
 0x71f   :  { %534 = vrot.lane.b32.xlu1 %v2863_v56, %s2984_s5 }
 0x726   :  { %v2865_v57 = vpop.eup %2864 }
 0x727   :  { %704 = vrot.lane.b32.xlu0 %v2865_v57, %s2984_s5 }
 0x791   :  { %v535_v58 = vpop.permute.xlu1 %534 }
 0x792   :  { %v537_v59 = vmul.f32 %v2859_v44, %v535_v58 }
 0x794   :  { %539 = vrot.lane.b32.xlu1 %v537_v59, %s2985_s30 }
 0x798   :  { %74 = vperm.xlu1 %2825, %v51_v60  }
 0x799   :  { %v705_v61 = vpop.permute.xlu0 %704 }
 0x79a   :  { %v707_v62 = vmul.f32 %v2861_v47, %v705_v61 }
 0x79c   :  { %709 = vrot.lane.b32.xlu0 %v707_v62, %s2985_s30 }
 0x806   :  { %v540_v63 = vpop.permute.xlu1 %539 }
 0x807   :  { %2456 = vmatmul.mubr.msk.f32.vlgmr.msra.gmra.mrb[4].mxu0 %vm172_vm1, %v540_v63 }
 0x808   :  { %2694 = vmatpush3.bf16.msra.mxu0 %v3084_v22  ;;  %2477 = vmatprep.mubr.msk.f32.mxu0 %vm2987_vm0, %v2988_v24 }
 0x809   :  { %2695 = vmatprep.subr.bf16.mxu0 %v2986_v21 }
 0x80c   :  { %2697 = vmatpush3.bf16.msra.mxu0 %v3095_v25 }
 0x80d   :  { %2704 = vmatprep.subr.bf16.mxu0 %v2986_v21 }
 0x80e   :  { %v710_v0 = vpop.permute.xlu0 %709 }
 0x80f   :  { %2478 = vmatmul.mubr.msk.f32.vlgmr.msra.gmra.mrb[4].mxu0 %vm172_vm1, %v710_v0 }
 0x810   :  { %2706 = vmatpush3.bf16.msra.mxu0 %v3111_v32  ;;  %2499 = vmatprep.mubr.msk.f32.mxu0 %vm2987_vm0, %v2988_v24 }
 0x811   :  { %2707 = vmatprep.subr.bf16.mxu0 %v2986_v21 }
 0x814   :  { %2709 = vmatpush3.bf16.msra.mxu0 %v3121_v36 }
 0x815   :  { %2716 = vmatprep.subr.bf16.mxu0 %v2986_v21 }
 0x817   :  { %2500 = vmatmul.mubr.msk.f32.vlgmr.msra.gmra.mrb[6].mxu0 %vm172_vm1, %v710_v0  ;;  %v75_v1 = vpop.permute.xlu1 %74 }
 0x818   :  { %2718 = vmatpush3.bf16.msra.mxu0 %v3150_v8  ;;  %2521 = vmatprep.mubr.msk.f32.mxu0 %vm2987_vm0, %v2988_v24  ;;  %v106_v7 = vmul.f32 %v3060_v3, %v75_v1 }
 0x819   :  { %2719 = vmatprep.subr.bf16.mxu0 %v2986_v21 }
 0x81a   :  { %v121_v9 = vadd.f32 %v3065_v4, %v106_v7 }
 0x81c   :  { %2721 = vmatpush3.bf16.msra.mxu0 %v3154_v11 }
 0x81d   :  { %2728 = vmatprep.subr.bf16.mxu0 %v2986_v21 }
 0x8e2   :  { %v779_v2 = vpop.f32.mrb[4].mxu0 }
 0x8e3   :  { %v2795_v5 = vadd.f32 %v3134_v37, %v779_v2  ;;  %v2479_v6 = vpop.f32.mrb[5].mxu0 }
 0x8e5   :  { %2866 = vtanh.f32 %v2795_v5  ;;  %v2260_v16 = vmul.f32 -1.442695, %v2795_v5 }
 0x8ea   :  { %v948_v10 = vpop.f32.mrb[6].mxu0 }
 0x8eb   :  { %v952_v12 = vadd.f32 %v948_v10, %v121_v9  ;;  %v2501_v13 = vpop.f32.mrb[7].mxu0 }
 0x8ed   :  { %2868 = vtanh.f32 %v952_v12  ;;  %v2263_v17 = vmul.f32 -1.442695, %v952_v12 }
 0x8ee   :  { %2870 = vpow2.f32 %v2260_v16 }
 0x8ef   :  { %v2867_v14 = vpop.eup %2866  ;;  %2872 = vpow2.f32 %v2263_v17 }
 0x8f0   :  { %792 = vrot.lane.b32.xlu0 %v2867_v14, %s2984_s5 }
 0x8f7   :  { %v2869_v15 = vpop.eup %2868 }
 0x8f8   :  { %962 = vrot.lane.b32.xlu1 %v2869_v15, %s2984_s5  ;;  %v2871_v18 = vpop.eup %2870 }
 0x8f9   :  { %v786_v19 = vadd.f32 1.0, %v2871_v18  ;;  %v2873_v20 = vpop.eup %2872 }
 0x8fa   :  { %v956_v23 = vadd.f32 1.0, %v2873_v20 }
 0x8fb   :  { %2874 = vrcp.f32 %v786_v19 }
 0x8fc   :  { %2876 = vrcp.f32 %v956_v23 }
 0x905   :  { %v2875_v26 = vpop.eup %2874 }
 0x906   :  { %v2877_v29 = vpop.eup %2876  ;;  %v790_v33 = vmul.f32 %v2875_v26, %v3198_v52 }
 0x907   :  { %v960_v38 = vmul.f32 %v2877_v29, %v3202_v55 }
 0x962   :  { %v793_v27 = vpop.permute.xlu0 %792 }
 0x963   :  { %v795_v28 = vmul.f32 %v2875_v26, %v793_v27  ;;  %v53_v27 = vld [vmem:[%s3447_s0 + $0xa] sm:$0x3] }
 0x965   :  { %797 = vrot.lane.b32.xlu0 %v795_v28, %s2985_s30 }
 0x96a   :  { %v963_v30 = vpop.permute.xlu1 %962 }
 0x96b   :  { %v965_v31 = vmul.f32 %v2877_v29, %v963_v30 }
 0x96d   :  { %967 = vrot.lane.b32.xlu1 %v965_v31, %s2985_s30 }
 0x9d7   :  { %v798_v34 = vpop.permute.xlu0 %797 }
 0x9d8   :  { %v3241_v35 = vadd.f32 %v798_v34, %v790_v33 }
 0x9da   :  { %2878 = vtanh.f32 %v3241_v35 }
 0x9df   :  { %v968_v39 = vpop.permute.xlu1 %967 }
 0x9e0   :  { %v3245_v40 = vadd.f32 %v968_v39, %v960_v38 }
 0x9e2   :  { %2880 = vtanh.f32 %v3245_v40 }
 0x9e4   :  { %v2879_v41 = vpop.eup %2878 }
 0x9e5   :  { %803 = vrot.lane.b32.xlu0 %v2879_v41, %s2984_s5 }
 0x9ec   :  { %v2881_v42 = vpop.eup %2880 }
 0x9ed   :  { %973 = vrot.lane.b32.xlu1 %v2881_v42, %s2984_s5 }
 0xa57   :  { %v804_v43 = vpop.permute.xlu0 %803 }
 0xa58   :  { %v806_v44 = vmul.f32 %v2875_v26, %v804_v43 }
 0xa5a   :  { %808 = vrot.lane.b32.xlu0 %v806_v44, %s2985_s30 }
 0xa5e   :  { %79 = vperm.xlu0 %2824, %v52_v45  }
 0xa5f   :  { %v974_v46 = vpop.permute.xlu1 %973 }
 0xa60   :  { %v976_v47 = vmul.f32 %v2877_v29, %v974_v46 }
 0xa62   :  { %978 = vrot.lane.b32.xlu1 %v976_v47, %s2985_s30 }
 0xacc   :  { %v809_v48 = vpop.permute.xlu0 %808 }
 0xacd   :  { %2489 = vmatmul.mubr.msk.f32.vlgmr.msra.gmra.mrb[4].mxu1 %vm172_vm1, %v809_v48 }
 0xace   :  { %2712 = vmatpush3.bf16.msra.mxu1 %v3084_v22  ;;  %2510 = vmatprep.mubr.msk.f32.mxu1 %vm2987_vm0, %v2988_v24 }
 0xacf   :  { %2713 = vmatprep.subr.bf16.mxu1 %v2986_v21 }
 0xad2   :  { %2715 = vmatpush3.bf16.msra.mxu1 %v3095_v25 }
 0xad3   :  { %2722 = vmatprep.subr.bf16.mxu1 %v2986_v21 }
 0xad4   :  { %v979_v49 = vpop.permute.xlu1 %978 }
 0xad5   :  { %2511 = vmatmul.mubr.msk.f32.vlgmr.msra.gmra.mrb[4].mxu1 %vm172_vm1, %v979_v49 }
 0xad6   :  { %2724 = vmatpush3.bf16.msra.mxu1 %v3111_v32  ;;  %2532 = vmatprep.mubr.msk.f32.mxu1 %vm2987_vm0, %v2988_v24 }
 0xad7   :  { %2725 = vmatprep.subr.bf16.mxu1 %v2986_v21 }
 0xada   :  { %2727 = vmatpush3.bf16.msra.mxu1 %v3121_v36 }
 0xadb   :  { %2734 = vmatprep.subr.bf16.mxu1 %v2986_v21 }
 0xadd   :  { %2533 = vmatmul.mubr.msk.f32.vlgmr.msra.gmra.mrb[6].mxu1 %vm172_vm1, %v979_v49  ;;  %v80_v50 = vpop.permute.xlu0 %79 }
 0xade   :  { %2736 = vmatpush3.bf16.msra.mxu1 %v3150_v8  ;;  %2554 = vmatprep.mubr.msk.f32.mxu1 %vm2987_vm0, %v2988_v24  ;;  %v107_v54 = vmul.f32 %v3060_v3, %v80_v50 }
 0xadf   :  { %2737 = vmatprep.subr.bf16.mxu1 %v2986_v21 }
 0xae0   :  { %v122_v55 = vadd.f32 %v3065_v4, %v107_v54 }
 0xae2   :  { %2739 = vmatpush3.bf16.msra.mxu1 %v3154_v11 }
 0xae3   :  { %2746 = vmatprep.subr.bf16.mxu1 %v2986_v21 }
 0xba8   :  { %v1048_v51 = vpop.f32.mrb[4].mxu1 }
 0xba9   :  { %v2796_v52 = vadd.f32 %v3134_v37, %v1048_v51  ;;  %v2512_v53 = vpop.f32.mrb[5].mxu1 }
 0xbab   :  { %2882 = vtanh.f32 %v2796_v52  ;;  %v2265_v61 = vmul.f32 -1.442695, %v2796_v52 }
 0xbb0   :  { %v1217_v56 = vpop.f32.mrb[6].mxu1 }
 0xbb1   :  { %v1221_v57 = vadd.f32 %v1217_v56, %v122_v55  ;;  %v2534_v58 = vpop.f32.mrb[7].mxu1 }
 0xbb3   :  { %2884 = vtanh.f32 %v1221_v57  ;;  %v2268_v62 = vmul.f32 -1.442695, %v1221_v57 }
 0xbb4   :  { %2886 = vpow2.f32 %v2265_v61 }
 0xbb5   :  { %v2883_v59 = vpop.eup %2882  ;;  %2888 = vpow2.f32 %v2268_v62 }
 0xbb6   :  { %1061 = vrot.lane.b32.xlu1 %v2883_v59, %s2984_s5 }
 0xbbd   :  { %v2885_v60 = vpop.eup %2884 }
 0xbbe   :  { %1231 = vrot.lane.b32.xlu0 %v2885_v60, %s2984_s5  ;;  %v2887_v63 = vpop.eup %2886 }
 0xbbf   :  { %v1055_v0 = vadd.f32 1.0, %v2887_v63  ;;  %v2889_v1 = vpop.eup %2888 }
 0xbc0   :  { %v1225_v2 = vadd.f32 1.0, %v2889_v1 }
 0xbc1   :  { %2890 = vrcp.f32 %v1055_v0 }
 0xbc2   :  { %2892 = vrcp.f32 %v1225_v2 }
 0xbcb   :  { %v2891_v5 = vpop.eup %2890 }
 0xbcc   :  { %v2893_v9 = vpop.eup %2892  ;;  %v1059_v13 = vmul.f32 %v2891_v5, %v3241_v35 }
 0xbcd   :  { %v1229_v16 = vmul.f32 %v2893_v9, %v3245_v40 }
 0xc28   :  { %v1062_v6 = vpop.permute.xlu1 %1061 }
 0xc29   :  { %v1064_v7 = vmul.f32 %v2891_v5, %v1062_v6  ;;  %v54_v6 = vld [vmem:[%s3447_s0 + $0xc] sm:$0x3] }
 0xc2b   :  { %1066 = vrot.lane.b32.xlu1 %v1064_v7, %s2985_s30 }
 0xc30   :  { %v1232_v10 = vpop.permute.xlu0 %1231 }
 0xc31   :  { %v1234_v12 = vmul.f32 %v2893_v9, %v1232_v10 }
 0xc33   :  { %1236 = vrot.lane.b32.xlu0 %v1234_v12, %s2985_s30 }
 0xc9d   :  { %v1067_v14 = vpop.permute.xlu1 %1066 }
 0xc9e   :  { %v3284_v15 = vadd.f32 %v1067_v14, %v1059_v13 }
 0xca0   :  { %2894 = vtanh.f32 %v3284_v15 }
 0xca5   :  { %v1237_v17 = vpop.permute.xlu0 %1236 }
 0xca6   :  { %v3288_v18 = vadd.f32 %v1237_v17, %v1229_v16 }
 0xca8   :  { %2896 = vtanh.f32 %v3288_v18 }
 0xcaa   :  { %v2895_v19 = vpop.eup %2894 }
 0xcab   :  { %1072 = vrot.lane.b32.xlu1 %v2895_v19, %s2984_s5 }
 0xcb2   :  { %v2897_v20 = vpop.eup %2896 }
 0xcb3   :  { %1242 = vrot.lane.b32.xlu0 %v2897_v20, %s2984_s5 }
 0xd1d   :  { %v1073_v23 = vpop.permute.xlu1 %1072 }
 0xd1e   :  { %v1075_v26 = vmul.f32 %v2891_v5, %v1073_v23 }
 0xd20   :  { %1077 = vrot.lane.b32.xlu1 %v1075_v26, %s2985_s30 }
 0xd24   :  { %84 = vperm.xlu1 %2825, %v53_v27  }
 0xd25   :  { %v1243_v28 = vpop.permute.xlu0 %1242 }
 0xd26   :  { %v1245_v29 = vmul.f32 %v2893_v9, %v1243_v28 }
 0xd28   :  { %1247 = vrot.lane.b32.xlu0 %v1245_v29, %s2985_s30 }
 0xd92   :  { %v1078_v30 = vpop.permute.xlu1 %1077 }
 0xd93   :  { %2522 = vmatmul.mubr.msk.f32.vlgmr.msra.gmra.mrb[8].mxu0 %vm172_vm1, %v1078_v30 }
 0xd94   :  { %2730 = vmatpush3.bf16.msra.mxu0 %v3084_v22  ;;  %2543 = vmatprep.mubr.msk.f32.mxu0 %vm2987_vm0, %v2988_v24 }
 0xd95   :  { %2731 = vmatprep.subr.bf16.mxu0 %v2986_v21 }
 0xd98   :  { %2733 = vmatpush3.bf16.msra.mxu0 %v3095_v25 }
 0xd99   :  { %2740 = vmatprep.subr.bf16.mxu0 %v2986_v21 }
 0xd9a   :  { %v1248_v31 = vpop.permute.xlu0 %1247 }
 0xd9b   :  { %2544 = vmatmul.mubr.msk.f32.vlgmr.msra.gmra.mrb[8].mxu0 %vm172_vm1, %v1248_v31 }
 0xd9c   :  { %2742 = vmatpush3.bf16.msra.mxu0 %v3111_v32  ;;  %2565 = vmatprep.mubr.msk.f32.mxu0 %vm2987_vm0, %v2988_v24 }
 0xd9d   :  { %2743 = vmatprep.subr.bf16.mxu0 %v2986_v21 }
 0xda0   :  { %2745 = vmatpush3.bf16.msra.mxu0 %v3121_v36 }
 0xda1   :  { %2752 = vmatprep.subr.bf16.mxu0 %v2986_v21 }
 0xda3   :  { %2566 = vmatmul.mubr.msk.f32.vlgmr.msra.gmra.mrb[10].mxu0 %vm172_vm1, %v1248_v31  ;;  %v85_v33 = vpop.permute.xlu1 %84 }
 0xda4   :  { %2754 = vmatpush3.bf16.msra.mxu0 %v3150_v8  ;;  %2587 = vmatprep.mubr.msk.f32.mxu0 %vm2987_vm0, %v2988_v24  ;;  %v108_v39 = vmul.f32 %v3060_v3, %v85_v33 }
 0xda5   :  { %2755 = vmatprep.subr.bf16.mxu0 %v2986_v21 }
 0xda6   :  { %v123_v40 = vadd.f32 %v3065_v4, %v108_v39 }
 0xda8   :  { %2757 = vmatpush3.bf16.msra.mxu0 %v3154_v11 }
 0xda9   :  { %2764 = vmatprep.subr.bf16.mxu0 %v2986_v21 }
 0xe6e   :  { %v1317_v34 = vpop.f32.mrb[8].mxu0 }
 0xe6f   :  { %v2797_v35 = vadd.f32 %v3134_v37, %v1317_v34  ;;  %v2545_v38 = vpop.f32.mrb[9].mxu0 }
 0xe71   :  { %2898 = vtanh.f32 %v2797_v35  ;;  %v2270_v46 = vmul.f32 -1.442695, %v2797_v35 }
 0xe76   :  { %v1486_v41 = vpop.f32.mrb[10].mxu0 }
 0xe77   :  { %v1490_v42 = vadd.f32 %v1486_v41, %v123_v40  ;;  %v2567_v43 = vpop.f32.mrb[11].mxu0 }
 0xe79   :  { %2900 = vtanh.f32 %v1490_v42  ;;  %v2273_v47 = vmul.f32 -1.442695, %v1490_v42 }
 0xe7a   :  { %2902 = vpow2.f32 %v2270_v46 }
 0xe7b   :  { %v2899_v44 = vpop.eup %2898  ;;  %2904 = vpow2.f32 %v2273_v47 }
 0xe7c   :  { %1330 = vrot.lane.b32.xlu0 %v2899_v44, %s2984_s5 }
 0xe83   :  { %v2901_v45 = vpop.eup %2900 }
 0xe84   :  { %1500 = vrot.lane.b32.xlu1 %v2901_v45, %s2984_s5  ;;  %v2903_v48 = vpop.eup %2902 }
 0xe85   :  { %v1324_v49 = vadd.f32 1.0, %v2903_v48  ;;  %v2905_v50 = vpop.eup %2904 }
 0xe86   :  { %v1494_v51 = vadd.f32 1.0, %v2905_v50 }
 0xe87   :  { %2906 = vrcp.f32 %v1324_v49  ;;  %v55_v49 = vld [vmem:[%s3447_s0 + $0xe] sm:$0x3] }
 0xe88   :  { %2908 = vrcp.f32 %v1494_v51 }
 0xe91   :  { %v2907_v52 = vpop.eup %2906 }
 0xe92   :  { %v2909_v55 = vpop.eup %2908  ;;  %v1328_v58 = vmul.f32 %v2907_v52, %v3284_v15 }
 0xe93   :  { %v1498_v61 = vmul.f32 %v2909_v55, %v3288_v18 }
 0xeee   :  { %v1331_v53 = vpop.permute.xlu0 %1330 }
 0xeef   :  { %v1333_v54 = vmul.f32 %v2907_v52, %v1331_v53 }
 0xef1   :  { %1335 = vrot.lane.b32.xlu0 %v1333_v54, %s2985_s30 }
 0xef6   :  { %v1501_v56 = vpop.permute.xlu1 %1500 }
 0xef7   :  { %v1503_v57 = vmul.f32 %v2909_v55, %v1501_v56 }
 0xef9   :  { %1505 = vrot.lane.b32.xlu1 %v1503_v57, %s2985_s30 }
 0xf63   :  { %v1336_v59 = vpop.permute.xlu0 %1335 }
 0xf64   :  { %v3327_v60 = vadd.f32 %v1336_v59, %v1328_v58 }
 0xf66   :  { %2910 = vtanh.f32 %v3327_v60 }
 0xf6b   :  { %v1506_v62 = vpop.permute.xlu1 %1505 }
 0xf6c   :  { %v3331_v63 = vadd.f32 %v1506_v62, %v1498_v61 }
 0xf6e   :  { %2912 = vtanh.f32 %v3331_v63 }
 0xf70   :  { %v2911_v0 = vpop.eup %2910 }
 0xf71   :  { %1341 = vrot.lane.b32.xlu0 %v2911_v0, %s2984_s5 }
 0xf78   :  { %v2913_v1 = vpop.eup %2912 }
 0xf79   :  { %1511 = vrot.lane.b32.xlu1 %v2913_v1, %s2984_s5 }
 0xfe3   :  { %v1342_v2 = vpop.permute.xlu0 %1341 }
 0xfe4   :  { %v1344_v5 = vmul.f32 %v2907_v52, %v1342_v2 }
 0xfe6   :  { %1346 = vrot.lane.b32.xlu0 %v1344_v5, %s2985_s30 }
 0xfea   :  { %89 = vperm.xlu0 %2824, %v54_v6  }
 0xfeb   :  { %v1512_v7 = vpop.permute.xlu1 %1511 }
 0xfec   :  { %v1514_v9 = vmul.f32 %v2909_v55, %v1512_v7 }
 0xfee   :  { %1516 = vrot.lane.b32.xlu1 %v1514_v9, %s2985_s30 }
0x1058   :  { %v1347_v10 = vpop.permute.xlu0 %1346 }
0x1059   :  { %2555 = vmatmul.mubr.msk.f32.vlgmr.msra.gmra.mrb[8].mxu1 %vm172_vm1, %v1347_v10 }
0x105a   :  { %2748 = vmatpush3.bf16.msra.mxu1 %v3084_v22  ;;  %2576 = vmatprep.mubr.msk.f32.mxu1 %vm2987_vm0, %v2988_v24 }
0x105b   :  { %2749 = vmatprep.subr.bf16.mxu1 %v2986_v21 }
0x105e   :  { %2751 = vmatpush3.bf16.msra.mxu1 %v3095_v25 }
0x105f   :  { %2758 = vmatprep.subr.bf16.mxu1 %v2986_v21 }
0x1060   :  { %v1517_v12 = vpop.permute.xlu1 %1516 }
0x1061   :  { %2577 = vmatmul.mubr.msk.f32.vlgmr.msra.gmra.mrb[8].mxu1 %vm172_vm1, %v1517_v12 }
0x1062   :  { %2760 = vmatpush3.bf16.msra.mxu1 %v3111_v32  ;;  %2598 = vmatprep.mubr.msk.f32.mxu1 %vm2987_vm0, %v2988_v24 }
0x1063   :  { %2761 = vmatprep.subr.bf16.mxu1 %v2986_v21 }
0x1066   :  { %2763 = vmatpush3.bf16.msra.mxu1 %v3121_v36 }
0x1067   :  { %2770 = vmatprep.subr.bf16.mxu1 %v2986_v21 }
0x1069   :  { %2599 = vmatmul.mubr.msk.f32.vlgmr.msra.gmra.mrb[10].mxu1 %vm172_vm1, %v1517_v12  ;;  %v90_v13 = vpop.permute.xlu0 %89 }
0x106a   :  { %2772 = vmatpush3.bf16.msra.mxu1 %v3150_v8  ;;  %2620 = vmatprep.mubr.msk.f32.mxu1 %vm2987_vm0, %v2988_v24  ;;  %v109_v17 = vmul.f32 %v3060_v3, %v90_v13 }
0x106b   :  { %2773 = vmatprep.subr.bf16.mxu1 %v2986_v21 }
0x106c   :  { %v124_v18 = vadd.f32 %v3065_v4, %v109_v17 }
0x106e   :  { %2775 = vmatpush3.bf16.msra.mxu1 %v3154_v11 }
0x106f   :  { %2782 = vmatprep.subr.bf16.mxu1 %v2986_v21 }
0x1134   :  { %v1586_v14 = vpop.f32.mrb[8].mxu1 }
0x1135   :  { %v2798_v15 = vadd.f32 %v3134_v37, %v1586_v14  ;;  %v2578_v16 = vpop.f32.mrb[9].mxu1 }
0x1137   :  { %2914 = vtanh.f32 %v2798_v15  ;;  %v2275_v26 = vmul.f32 -1.442695, %v2798_v15 }
0x113c   :  { %v1755_v8 = vpop.f32.mrb[10].mxu1 }
0x113d   :  { %v1759_v19 = vadd.f32 %v1755_v8, %v124_v18  ;;  %v2600_v20 = vpop.f32.mrb[11].mxu1 }
0x113f   :  { %2916 = vtanh.f32 %v1759_v19  ;;  %v2278_v27 = vmul.f32 -1.442695, %v1759_v19 }
0x1140   :  { %2918 = vpow2.f32 %v2275_v26 }
0x1141   :  { %v2915_v23 = vpop.eup %2914  ;;  %2920 = vpow2.f32 %v2278_v27 }
0x1142   :  { %1599 = vrot.lane.b32.xlu1 %v2915_v23, %s2984_s5 }
0x1149   :  { %v2917_v11 = vpop.eup %2916 }
0x114a   :  { %1769 = vrot.lane.b32.xlu0 %v2917_v11, %s2984_s5  ;;  %v2919_v28 = vpop.eup %2918 }
0x114b   :  { %v1593_v29 = vadd.f32 1.0, %v2919_v28  ;;  %v2921_v3 = vpop.eup %2920 }
0x114c   :  { %v1763_v30 = vadd.f32 1.0, %v2921_v3 }
0x114d   :  { %2922 = vrcp.f32 %v1593_v29 }
0x114e   :  { %2924 = vrcp.f32 %v1763_v30 }
0x1157   :  { %v2923_v4 = vpop.eup %2922 }
0x1158   :  { %v2925_v34 = vpop.eup %2924  ;;  %v1597_v39 = vmul.f32 %v2923_v4, %v3327_v60 }
0x1159   :  { %v1767_v42 = vmul.f32 %v2925_v34, %v3331_v63 }
0x11b4   :  { %v1600_v31 = vpop.permute.xlu1 %1599 }
0x11b5   :  { %v1602_v33 = vmul.f32 %v2923_v4, %v1600_v31 }
0x11b7   :  { %1604 = vrot.lane.b32.xlu1 %v1602_v33, %s2985_s30 }
0x11bc   :  { %v1770_v35 = vpop.permute.xlu0 %1769 }
0x11bd   :  { %v1772_v38 = vmul.f32 %v2925_v34, %v1770_v35 }
0x11bf   :  { %1774 = vrot.lane.b32.xlu0 %v1772_v38, %s2985_s30 }
0x1229   :  { %v1605_v40 = vpop.permute.xlu1 %1604 }
0x122a   :  { %v3370_v41 = vadd.f32 %v1605_v40, %v1597_v39 }
0x122c   :  { %2926 = vtanh.f32 %v3370_v41 }
0x1231   :  { %v1775_v43 = vpop.permute.xlu0 %1774 }
0x1232   :  { %v3374_v44 = vadd.f32 %v1775_v43, %v1767_v42 }
0x1234   :  { %2928 = vtanh.f32 %v3374_v44 }
0x1236   :  { %v2927_v45 = vpop.eup %2926 }
0x1237   :  { %1610 = vrot.lane.b32.xlu1 %v2927_v45, %s2984_s5  ;;  %v2154_v45 = vld [vmem:[%s3454_s7 + $0x10] sm:$0xff] }
0x123e   :  { %v2929_v46 = vpop.eup %2928 }
0x123f   :  { %1780 = vrot.lane.b32.xlu0 %v2929_v46, %s2984_s5 }
0x12a9   :  { %v1611_v47 = vpop.permute.xlu1 %1610 }
0x12aa   :  { %v1613_v48 = vmul.f32 %v2923_v4, %v1611_v47  ;;  %v2155_v47 = vld [vmem:[%s3454_s7 + $0x18] sm:$0xff] }
0x12ac   :  { %1615 = vrot.lane.b32.xlu1 %v1613_v48, %s2985_s30  ;;  %v2792_v48 = vpack.c.bf16 %v2155_v47, %v2154_v45 }
0x12b0   :  { %94 = vperm.xlu1 %2825, %v55_v49  }
0x12b1   :  { %v1781_v50 = vpop.permute.xlu0 %1780 }
0x12b2   :  { %v1783_v51 = vmul.f32 %v2925_v34, %v1781_v50 }
0x12b4   :  { %1785 = vrot.lane.b32.xlu0 %v1783_v51, %s2985_s30 }
0x131e   :  { %v1616_v52 = vpop.permute.xlu1 %1615 }
0x131f   :  { %2588 = vmatmul.mubr.msk.f32.vlgmr.msra.gmra.mrb[12].mxu0 %vm172_vm1, %v1616_v52 }
0x1320   :  { %2766 = vmatpush3.bf16.msra.mxu0 %v3084_v22  ;;  %2609 = vmatprep.mubr.msk.f32.mxu0 %vm2987_vm0, %v2988_v24 }
0x1321   :  { %2767 = vmatprep.subr.bf16.mxu0 %v2986_v21 }
0x1324   :  { %2769 = vmatpush3.bf16.msra.mxu0 %v3095_v25 }
0x1325   :  { %2776 = vmatprep.subr.bf16.mxu0 %v2986_v21 }
0x1326   :  { %v1786_v53 = vpop.permute.xlu0 %1785 }
0x1327   :  { %2610 = vmatmul.mubr.msk.f32.vlgmr.msra.gmra.mrb[12].mxu0 %vm172_vm1, %v1786_v53 }
0x1328   :  { %2778 = vmatpush3.bf16.msra.mxu0 %v3111_v32  ;;  %2631 = vmatprep.mubr.msk.f32.mxu0 %vm2987_vm0, %v2988_v24  ;;  %v2954_v32 = vld [vmem:[%s3448_s1] ss:$0 sm:$0xff] }
0x1329   :  { %2779 = vmatprep.subr.bf16.mxu0 %v2986_v21 }
0x132c   :  { %2781 = vmatpush3.bf16.msra.mxu0 %v3121_v36  ;;  %v2955_v36 = vld [vmem:[%s3449_s2] ss:$0 sm:$0xff] }
0x132d   :  { %2788 = vmatprep.subr.bf16.mxu0 %v2986_v21 }
0x132f   :  { %2632 = vmatmul.mubr.msk.f32.vlgmr.msra.gmra.mrb[14].mxu0 %vm172_vm1, %v1786_v53  ;;  %v95_v54 = vpop.permute.xlu1 %94  ;;  %v2286_v53 = vld [vmem:[#allocation2] ss:$0 sm:$0xff] }
0x1330   :  { %2653 = vmatprep.mubr.msk.f32.mxu0 %vm2987_vm0, %v2988_v24  ;;  %v110_v58 = vmul.f32 %v2954_v32, %v95_v54 }
0x1332   :  { %v125_v59 = vadd.f32 %v2955_v36, %v110_v58 }
0x13fa   :  { %v1855_v55 = vpop.f32.mrb[12].mxu0 }
0x13fb   :  { %v2799_v56 = vadd.f32 %v3134_v37, %v1855_v55  ;;  %v2611_v57 = vpop.f32.mrb[13].mxu0 }
0x13fd   :  { %2930 = vtanh.f32 %v2799_v56  ;;  %v2280_v1 = vmul.f32 -1.442695, %v2799_v56 }
0x1402   :  { %v2024_v60 = vpop.f32.mrb[14].mxu0 }
0x1403   :  { %v2028_v61 = vadd.f32 %v2024_v60, %v125_v59  ;;  %v2633_v62 = vpop.f32.mrb[15].mxu0 }
0x1405   :  { %2932 = vtanh.f32 %v2028_v61  ;;  %v2283_v2 = vmul.f32 -1.442695, %v2028_v61 }
0x1406   :  { %2934 = vpow2.f32 %v2280_v1 }
0x1407   :  { %v2931_v63 = vpop.eup %2930  ;;  %2936 = vpow2.f32 %v2283_v2 }
0x1408   :  { %1868 = vrot.lane.b32.xlu0 %v2931_v63, %s2984_s5 }
0x140f   :  { %v2933_v0 = vpop.eup %2932 }
0x1410   :  { %2038 = vrot.lane.b32.xlu1 %v2933_v0, %s2984_s5  ;;  %v2935_v5 = vpop.eup %2934 }
0x1411   :  { %v1862_v6 = vadd.f32 1.0, %v2935_v5  ;;  %v2937_v7 = vpop.eup %2936 }
0x1412   :  { %v2032_v9 = vadd.f32 1.0, %v2937_v7 }
0x1413   :  { %2938 = vrcp.f32 %v1862_v6 }
0x1414   :  { %2940 = vrcp.f32 %v2032_v9 }
0x141d   :  { %v2939_v10 = vpop.eup %2938 }
0x141e   :  { %v2941_v14 = vpop.eup %2940  ;;  %v1866_v17 = vmul.f32 %v2939_v10, %v3370_v41 }
0x141f   :  { %v2036_v19 = vmul.f32 %v2941_v14, %v3374_v44  ;;  %v2153_v44 = vld [vmem:[%s3454_s7 + $0x8] sm:$0xff] }
0x147a   :  { %v1869_v12 = vpop.permute.xlu0 %1868 }
0x147b   :  { %v1871_v13 = vmul.f32 %v2939_v10, %v1869_v12 }
0x147d   :  { %1873 = vrot.lane.b32.xlu0 %v1871_v13, %s2985_s30 }
0x1482   :  { %v2039_v15 = vpop.permute.xlu1 %2038 }
0x1483   :  { %v2041_v16 = vmul.f32 %v2941_v14, %v2039_v15 }
0x1485   :  { %2043 = vrot.lane.b32.xlu1 %v2041_v16, %s2985_s30 }
0x14ef   :  { %v1874_v18 = vpop.permute.xlu0 %1873 }
0x14f0   :  { %v1876_v8 = vadd.f32 %v1874_v18, %v1866_v17 }
0x14f2   :  { %2942 = vtanh.f32 %v1876_v8 }
0x14f7   :  { %v2044_v20 = vpop.permute.xlu1 %2043 }
0x14f8   :  { %v2046_v23 = vadd.f32 %v2044_v20, %v2036_v19 }
0x14fa   :  { %2944 = vtanh.f32 %v2046_v23 }
0x14fc   :  { %v2943_v11 = vpop.eup %2942 }
0x14fd   :  { %1879 = vrot.lane.b32.xlu0 %v2943_v11, %s2984_s5 }
0x1504   :  { %v2945_v26 = vpop.eup %2944 }
0x1505   :  { %2049 = vrot.lane.b32.xlu1 %v2945_v26, %s2984_s5 }
0x156f   :  { %v1880_v27 = vpop.permute.xlu0 %1879 }
0x1570   :  { %v1882_v28 = vmul.f32 %v2939_v10, %v1880_v27 }
0x1572   :  { %1884 = vrot.lane.b32.xlu0 %v1882_v28, %s2985_s30 }
0x1577   :  { %v2050_v29 = vpop.permute.xlu1 %2049 }
0x1578   :  { %v2052_v3 = vmul.f32 %v2941_v14, %v2050_v29 }
0x157a   :  { %2054 = vrot.lane.b32.xlu1 %v2052_v3, %s2985_s30 }
0x15e4   :  { %v1885_v30 = vpop.permute.xlu0 %1884 }
0x15e5   :  { %2621 = vmatmul.mubr.msk.f32.vlgmr.msra.gmra.mrb[12].mxu1 %vm172_vm1, %v1885_v30 }
0x15e6   :  { %2784 = vmatpush3.bf16.msra.mxu1 %v3084_v22  ;;  %2642 = vmatprep.mubr.msk.f32.mxu1 %vm2987_vm0, %v2988_v24 }
0x15e7   :  { %2785 = vmatprep.subr.bf16.mxu1 %v2986_v21 }
0x15ea   :  { %2787 = vmatpush3.bf16.msra.mxu1 %v3095_v25 }
0x15ec   :  { %v2055_v4 = vpop.permute.xlu1 %2054 }
0x15ed   :  { %2643 = vmatmul.mubr.msk.f32.vlgmr.msra.gmra.mrb[12].mxu1 %vm172_vm1, %v2055_v4 }
0x16c0   :  { %v2124_v31 = vpop.f32.mrb[12].mxu1 }
0x16c1   :  { %v2800_v33 = vadd.f32 %v3134_v37, %v2124_v31  ;;  %v2644_v34 = vpop.f32.mrb[13].mxu1  ;;  %v2152_v37 = vld [vmem:[%s3454_s7] sm:$0xff] }
0x16c2   :  { %v2789_v46 = vpack.c.bf16 %v2153_v44, %v2152_v37 }
0x16c3   :  { %2946 = vtanh.f32 %v2800_v33  ;;  %v2285_v38 = vmul.f32 -1.442695, %v2800_v33 }
0x16c4   :  { %2790 = vmatpush3.bf16.msra.mxu0 %v2789_v46 }
0x16c5   :  { %2948 = vpow2.f32 %v2285_v38  ;;  %2791 = vmatprep.subr.bf16.mxu0 %v2986_v21 }
0x16c8   :  { %2793 = vmatpush3.bf16.msra.mxu0 %v2792_v48 }
0x16cd   :  { %v2947_v35 = vpop.eup %2946 }
0x16ce   :  { %2137 = vrot.lane.b32.xlu0 %v2947_v35, %s2984_s5 }
0x16cf   :  { %v2949_v22 = vpop.eup %2948 }
0x16d0   :  { %v2131_v39 = vadd.f32 1.0, %v2949_v22 }
0x16d2   :  { %2950 = vrcp.f32 %v2131_v39 }
0x16dc   :  { %v2951_v24 = vpop.eup %2950 }
0x16dd   :  { %v2135_v25 = vmul.f32 %v2951_v24, %v1876_v8 }
0x1740   :  { %v2138_v40 = vpop.permute.xlu0 %2137 }
0x1741   :  { %v2140_v41 = vmul.f32 %v2951_v24, %v2138_v40 }
0x1743   :  { %2142 = vrot.lane.b32.xlu1 %v2140_v41, %s2985_s30 }
0x17b5   :  { %v2143_v42 = vpop.permute.xlu1 %2142 }
0x17b6   :  { %v2145_v43 = vadd.f32 %v2143_v42, %v2135_v25 }
0x17b8   :  { %2952 = vtanh.f32 %v2145_v43 }
0x17c2   :  { %v2953_v49 = vpop.eup %2952 }
0x17c3   :  { %2148 = vrot.lane.b32.xlu0 %v2953_v49, %s2984_s5 }
0x1835   :  { %v2149_v50 = vpop.permute.xlu0 %2148 }
0x1836   :  { %v2151_v51 = vmul.f32 %v2951_v24, %v2149_v50 }
0x1838   :  { %2164 = vrot.lane.b32.xlu1 %v2151_v51, %s2985_s30 }
0x18aa   :  { %v2165_v52 = vpop.permute.xlu1 %2164 }
0x18ab   :  { %2654 = vmatmul.mubr.msk.f32.vlgmr.msra.gmra.mrb[16].mxu0 %vm172_vm1, %v2165_v52 }
0x197e   :  { %v2234_v54 = vpop.f32.mrb[16].mxu0 }
0x197f   :  { %v2235_v55 = vadd.f32 %v2286_v53, %v2234_v54  ;;  %v2655_v56 = vpop.f32.mrb[17].mxu0 }
0x1981   :  { %2239 = vst.msk [vmem:[%s3456_s9] sm:$0x3] %vm2238_vm2, %v2235_v55 }
0x1982   :  { %2244 = vsyncpa [#allocation4], 1 }

</bundles_post_ra>
